<compile_context>
chip_gen: v7x
topology: tpu7x:2x2x1
jax: 0.10.0
libtpu: 0.0.40
codegen_flags: <defaults>
</compile_context>

<pallas_src>
import jax
import jax.numpy as jnp
from jax.experimental import pallas as pl
from jax.experimental.pallas import tpu as pltpu


def _lstm_classifier_kernel(
    x_ref,        # (S*B, E)   time-major embeddings, batch padded, row t*B + b
    wih0_ref,     # (E, 4H)    gate order (i, f, o, g)
    whh0_ref,     # (H, 4H)
    b0_ref,       # (1, 4H)
    w1_ref,       # (2H, 4H)   [W_ih1; W_hh1] stacked
    b1_ref,       # (1, 4H)
    w2_ref,       # (2H, 4H)   [W_ih2; W_hh2] stacked
    b2_ref,       # (1, 4H)
    wfc1_ref,     # (H, 256)
    bfc1_ref,     # (1, 256)
    wfc2_ref,     # (1, 256)   fc2 weight as a row vector
    bfc2_ref,     # (1, 1)
    out_ref,      # (B, 1)
):
    B = out_ref.shape[0]
    H = whh0_ref.shape[0]
    S = x_ref.shape[0] // B
    f32 = jnp.float32

    # ---- Prologue: layer-0 input projection for every timestep at once. ----
    xg0 = (jnp.dot(x_ref[...], wih0_ref[...], preferred_element_type=f32)
           + b0_ref[...])                        # (S*B, 4H), bias folded in

    # Hoist weight loads / bias broadcasts out of the time loop.
    whh0 = whh0_ref[...]
    w1 = w1_ref[...]
    w2 = w2_ref[...]
    b1 = jnp.broadcast_to(b1_ref[...], (B, 4 * H))
    b2 = jnp.broadcast_to(b2_ref[...], (B, 4 * H))

    def cell(gates, c_prev):
        # Gate order (i, f, o, g): sigmoid over the full vreg (cheap EUP op),
        # tanh only on the last quarter.
        sig = jax.nn.sigmoid(gates)
        i_g = sig[:, 0 * H:1 * H]
        f_g = sig[:, 1 * H:2 * H]
        o_g = sig[:, 2 * H:3 * H]
        g_g = jnp.tanh(gates[:, 3 * H:4 * H])
        c_new = f_g * c_prev + i_g * g_g
        h_new = o_g * jnp.tanh(c_new)
        return h_new, c_new

    zeros = jnp.zeros((B, H), f32)
    h0, c0 = zeros, zeros
    h1, c1 = zeros, zeros
    h2, c2 = zeros, zeros

    # S is small and static -> fully unrolled straight-line recurrence.
    # (For long sequences switch to lax.fori_loop(..., unroll=k) or a
    #  time-blocked grid axis.)
    for t in range(S):
        g0 = xg0[t * B:(t + 1) * B] + jnp.dot(
            h0, whh0, preferred_element_type=f32)
        h0, c0 = cell(g0, c0)

        g1 = jnp.dot(jnp.concatenate([h0, h1], axis=-1), w1,
                     preferred_element_type=f32) + b1
        h1, c1 = cell(g1, c1)

        g2 = jnp.dot(jnp.concatenate([h1, h2], axis=-1), w2,
                     preferred_element_type=f32) + b2
        h2, c2 = cell(g2, c2)

    # ---- Head: Linear(H,256) -> ReLU -> (Dropout = identity at eval) ->
    #      Linear(256,1) -> Sigmoid.  The N=1 matmul is a lane reduction. ----
    z = jnp.dot(h2, wfc1_ref[...], preferred_element_type=f32) + bfc1_ref[...]
    z = jnp.maximum(z, 0.0)
    logit = jnp.sum(z * wfc2_ref[...], axis=-1, keepdims=True) + bfc2_ref[...]
    out_ref[...] = jax.nn.sigmoid(logit)


def _permute_gates(w, hidden):
    """PyTorch gate order (i, f, g, o) -> kernel order (i, f, o, g), last axis."""
    return jnp.concatenate(
        [w[..., :2 * hidden],
         w[..., 3 * hidden:4 * hidden],
         w[..., 2 * hidden:3 * hidden]], axis=-1)


def rnn_classifier_forward(sequence, params):
    """sequence: int32 (seq_len, batch). Returns float32 (batch,) probabilities."""
    seq_len, batch = sequence.shape
    emb = params["embedding"]                        # (V, E)
    embed_dim = emb.shape[1]
    hidden = params["whh0"].shape[0]                 # params are (in, 4H)

    # Glue: embedding gather in plain JAX; pad batch to a sublane multiple.
    b_pad = max(8, -(-batch // 8) * 8)
    x_emb = jnp.take(emb, sequence, axis=0)          # (S, B, E) float32
    if b_pad != batch:
        x_emb = jnp.pad(x_emb, ((0, 0), (0, b_pad - batch), (0, 0)))
    x_flat = x_emb.reshape(seq_len * b_pad, embed_dim)

    # One-time weight repacking: permute gate columns, stack ih/hh for layers
    # 1 and 2, expose fc2 as a row vector for the lane-reduce head.
    wih0 = _permute_gates(params["wih0"], hidden)
    whh0 = _permute_gates(params["whh0"], hidden)
    b0 = _permute_gates(params["b0"], hidden)
    w1 = _permute_gates(
        jnp.concatenate([params["wih1"], params["whh1"]], axis=0), hidden)
    b1 = _permute_gates(params["b1"], hidden)
    w2 = _permute_gates(
        jnp.concatenate([params["wih2"], params["whh2"]], axis=0), hidden)
    b2 = _permute_gates(params["b2"], hidden)
    wfc2_row = params["wfc2"].T                      # (1, 256)

    # Everything is tiny (<100 KB total) -> single grid-less invocation with
    # all operands whole-block resident in VMEM.
    vmem = pl.BlockSpec(memory_space=pltpu.MemorySpace.VMEM)
    out = pl.pallas_call(
        _lstm_classifier_kernel,
        out_shape=jax.ShapeDtypeStruct((b_pad, 1), jnp.float32),
        in_specs=[vmem] * 12,
        out_specs=vmem,
    )(
        x_flat,
        wih0, whh0, b0,
        w1, b1,
        w2, b2,
        params["wfc1"], params["bfc1"],
        wfc2_row, params["bfc2"],
    )
    return out[:batch, 0]                            # torch.squeeze -> (batch,)


def init_params(key, num_embeddings, embedding_dim, hidden_size):
    """Deterministic synthetic parameters (uniform, PyTorch-like scale).
    LSTM weights are stored pre-transposed as (in_features, out_features) with
    PyTorch gate order (i, f, g, o)."""
    k = 1.0 / jnp.sqrt(jnp.float32(hidden_size))
    keys = jax.random.split(key, 16)
    u = lambda kk, shape, s: jax.random.uniform(kk, shape, jnp.float32, -s, s)

    params = {
        "embedding": u(keys[0], (num_embeddings, embedding_dim), 1.0),
        # layer 0 (input = embedding_dim)
        "wih0": u(keys[1], (embedding_dim, 4 * hidden_size), k),
        "whh0": u(keys[2], (hidden_size, 4 * hidden_size), k),
        "b0":   u(keys[3], (1, 4 * hidden_size), k),   # b_ih + b_hh folded
        # layers 1, 2 (input = hidden_size)
        "wih1": u(keys[4], (hidden_size, 4 * hidden_size), k),
        "whh1": u(keys[5], (hidden_size, 4 * hidden_size), k),
        "b1":   u(keys[6], (1, 4 * hidden_size), k),
        "wih2": u(keys[7], (hidden_size, 4 * hidden_size), k),
        "whh2": u(keys[8], (hidden_size, 4 * hidden_size), k),
        "b2":   u(keys[9], (1, 4 * hidden_size), k),
        # output head: Linear(H, 256) -> ReLU -> Dropout -> Linear(256, 1) -> Sigmoid
        "wfc1": u(keys[10], (hidden_size, 256), k),
        "bfc1": u(keys[11], (1, 256), k),
        "wfc2": u(keys[12], (256, 1), 1.0 / 16.0),
        "bfc2": u(keys[13], (1, 1), 1.0 / 16.0),
    }
    return params


def reference_forward(sequence, params):
    """Pure-JAX reference of the same forward pass (for a correctness check)."""
    x = jnp.take(params["embedding"], sequence, axis=0)  # (S, B, E)
    hidden = params["whh0"].shape[0]
    batch = sequence.shape[1]

    def cell(x_t, h_prev, c_prev, wih, whh, b):
        gates = x_t @ wih + h_prev @ whh + b
        i = jax.nn.sigmoid(gates[:, 0 * hidden:1 * hidden])
        f = jax.nn.sigmoid(gates[:, 1 * hidden:2 * hidden])
        g = jnp.tanh(gates[:, 2 * hidden:3 * hidden])
        o = jax.nn.sigmoid(gates[:, 3 * hidden:4 * hidden])
        c = f * c_prev + i * g
        h = o * jnp.tanh(c)
        return h, c

    h = [jnp.zeros((batch, hidden), jnp.float32) for _ in range(3)]
    c = [jnp.zeros((batch, hidden), jnp.float32) for _ in range(3)]
    layer_w = [("wih0", "whh0", "b0"), ("wih1", "whh1", "b1"), ("wih2", "whh2", "b2")]
    for t in range(sequence.shape[0]):
        inp = x[t]
        for l, (wi, wh, bb) in enumerate(layer_w):
            h[l], c[l] = cell(inp, h[l], c[l], params[wi], params[wh], params[bb])
            inp = h[l]
    z = jnp.maximum(h[2] @ params["wfc1"] + params["bfc1"], 0.0)
    logits = z @ params["wfc2"] + params["bfc2"]
    return jnp.squeeze(jax.nn.sigmoid(logits), axis=-1)


if __name__ == "__main__":
    num_embeddings = 32
    embedding_dim = 16
    hidden_size = 32
    seq_len = 8
    batch = 4

    key = jax.random.PRNGKey(0)
    k_param, k_seq = jax.random.split(key)
    params = init_params(k_param, num_embeddings, embedding_dim, hidden_size)
    sequence = jax.random.randint(k_seq, (seq_len, batch), 0, num_embeddings,
                                  dtype=jnp.int32)

    out = rnn_classifier_forward(sequence, params)
    out = jax.block_until_ready(out)

    ref = jax.block_until_ready(reference_forward(sequence, params))
    assert out.shape == (batch,)
    assert jnp.all((out > 0.0) & (out < 1.0))
    assert jnp.allclose(out, ref, atol=1e-5, rtol=1e-5)

    print("KERNEL_OK")
</pallas_src>

<mosaic_0001>
module attributes {stable_mosaic.version = 11 : i64} {
  func.func @_lstm_classifier_kernel(%arg0: memref<64x16xf32, #tpu.memory_space<vmem>>, %arg1: memref<16x128xf32, #tpu.memory_space<vmem>>, %arg2: memref<32x128xf32, #tpu.memory_space<vmem>>, %arg3: memref<1x128xf32, #tpu.memory_space<vmem>>, %arg4: memref<64x128xf32, #tpu.memory_space<vmem>>, %arg5: memref<1x128xf32, #tpu.memory_space<vmem>>, %arg6: memref<64x128xf32, #tpu.memory_space<vmem>>, %arg7: memref<1x128xf32, #tpu.memory_space<vmem>>, %arg8: memref<32x256xf32, #tpu.memory_space<vmem>>, %arg9: memref<1x256xf32, #tpu.memory_space<vmem>>, %arg10: memref<1x256xf32, #tpu.memory_space<vmem>>, %arg11: memref<1x1xf32, #tpu.memory_space<vmem>>, %arg12: memref<8x1xf32, #tpu.memory_space<vmem>>) attributes {dimension_semantics = [], scalar_prefetch = 0 : i64, scratch_operands = 0 : i64, tpu.core_type = #tpu.core_type<tc>} {
    %c0 = arith.constant 0 : index
    %c0_0 = arith.constant 0 : index
    %0 = vector.load %arg0[%c0, %c0_0] : memref<64x16xf32, #tpu.memory_space<vmem>>, vector<64x16xf32>
    %c0_1 = arith.constant 0 : index
    %c0_2 = arith.constant 0 : index
    %1 = vector.load %arg1[%c0_1, %c0_2] : memref<16x128xf32, #tpu.memory_space<vmem>>, vector<16x128xf32>
    %cst = arith.constant dense<0.000000e+00> : vector<64x128xf32>
    %2 = tpu.matmul %0, %1, %cst {dimension_numbers = #tpu.dot_dimension_numbers<[1], [0], [0], [1], [0, 0, 1, 1], [], []>} : vector<64x16xf32>, vector<16x128xf32>, vector<64x128xf32> -> vector<64x128xf32>
    %c0_3 = arith.constant 0 : index
    %c0_4 = arith.constant 0 : index
    %3 = vector.load %arg3[%c0_3, %c0_4] : memref<1x128xf32, #tpu.memory_space<vmem>>, vector<1x128xf32>
    %4 = vector.broadcast %3 : vector<1x128xf32> to vector<64x128xf32>
    %5 = arith.addf %2, %4 : vector<64x128xf32>
    %c0_5 = arith.constant 0 : index
    %c0_6 = arith.constant 0 : index
    %6 = vector.load %arg2[%c0_5, %c0_6] : memref<32x128xf32, #tpu.memory_space<vmem>>, vector<32x128xf32>
    %c0_7 = arith.constant 0 : index
    %c0_8 = arith.constant 0 : index
    %7 = vector.load %arg4[%c0_7, %c0_8] : memref<64x128xf32, #tpu.memory_space<vmem>>, vector<64x128xf32>
    %c0_9 = arith.constant 0 : index
    %c0_10 = arith.constant 0 : index
    %8 = vector.load %arg6[%c0_9, %c0_10] : memref<64x128xf32, #tpu.memory_space<vmem>>, vector<64x128xf32>
    %c0_11 = arith.constant 0 : index
    %c0_12 = arith.constant 0 : index
    %9 = vector.load %arg5[%c0_11, %c0_12] : memref<1x128xf32, #tpu.memory_space<vmem>>, vector<1x128xf32>
    %10 = vector.shape_cast %9 : vector<1x128xf32> to vector<1x128xf32>
    %11 = vector.broadcast %10 : vector<1x128xf32> to vector<8x128xf32>
    %c0_13 = arith.constant 0 : index
    %c0_14 = arith.constant 0 : index
    %12 = vector.load %arg7[%c0_13, %c0_14] : memref<1x128xf32, #tpu.memory_space<vmem>>, vector<1x128xf32>
    %13 = vector.shape_cast %12 : vector<1x128xf32> to vector<1x128xf32>
    %14 = vector.broadcast %13 : vector<1x128xf32> to vector<8x128xf32>
    %cst_15 = arith.constant 0.000000e+00 : f32
    %15 = vector.broadcast %cst_15 : f32 to vector<8x32xf32>
    %16 = vector.extract_strided_slice %5 {offsets = [0, 0], sizes = [8, 128], strides = [1, 1]} : vector<64x128xf32> to vector<8x128xf32>
    %cst_16 = arith.constant dense<0.000000e+00> : vector<8x128xf32>
    %17 = tpu.matmul %15, %6, %cst_16 {dimension_numbers = #tpu.dot_dimension_numbers<[1], [0], [0], [1], [0, 0, 1, 1], [], []>} : vector<8x32xf32>, vector<32x128xf32>, vector<8x128xf32> -> vector<8x128xf32>
    %18 = arith.addf %16, %17 : vector<8x128xf32>
    %19 = arith.negf %18 : vector<8x128xf32>
    %20 = math.exp %19 : vector<8x128xf32>
    %cst_17 = arith.constant 1.000000e+00 : f32
    %21 = vector.broadcast %cst_17 : f32 to vector<8x128xf32>
    %22 = arith.addf %21, %20 : vector<8x128xf32>
    %23 = arith.divf %21, %22 : vector<8x128xf32>
    %24 = vector.extract_strided_slice %23 {offsets = [0, 0], sizes = [8, 32], strides = [1, 1]} : vector<8x128xf32> to vector<8x32xf32>
    %25 = vector.extract_strided_slice %23 {offsets = [0, 32], sizes = [8, 32], strides = [1, 1]} : vector<8x128xf32> to vector<8x32xf32>
    %26 = vector.extract_strided_slice %23 {offsets = [0, 64], sizes = [8, 32], strides = [1, 1]} : vector<8x128xf32> to vector<8x32xf32>
    %27 = vector.extract_strided_slice %18 {offsets = [0, 96], sizes = [8, 32], strides = [1, 1]} : vector<8x128xf32> to vector<8x32xf32>
    %28 = math.tanh %27 : vector<8x32xf32>
    %29 = arith.mulf %25, %15 : vector<8x32xf32>
    %30 = arith.mulf %24, %28 : vector<8x32xf32>
    %31 = arith.addf %29, %30 : vector<8x32xf32>
    %32 = math.tanh %31 : vector<8x32xf32>
    %33 = arith.mulf %26, %32 : vector<8x32xf32>
    %34 = tpu.concatenate %33, %15 in 1 : vector<8x32xf32>, vector<8x32xf32> -> vector<8x64xf32>
    %cst_18 = arith.constant dense<0.000000e+00> : vector<8x128xf32>
    %35 = tpu.matmul %34, %7, %cst_18 {dimension_numbers = #tpu.dot_dimension_numbers<[1], [0], [0], [1], [0, 0, 1, 1], [], []>} : vector<8x64xf32>, vector<64x128xf32>, vector<8x128xf32> -> vector<8x128xf32>
    %36 = arith.addf %35, %11 : vector<8x128xf32>
    %37 = arith.negf %36 : vector<8x128xf32>
    %38 = math.exp %37 : vector<8x128xf32>
    %cst_19 = arith.constant 1.000000e+00 : f32
    %39 = vector.broadcast %cst_19 : f32 to vector<8x128xf32>
    %40 = arith.addf %39, %38 : vector<8x128xf32>
    %41 = arith.divf %39, %40 : vector<8x128xf32>
    %42 = vector.extract_strided_slice %41 {offsets = [0, 0], sizes = [8, 32], strides = [1, 1]} : vector<8x128xf32> to vector<8x32xf32>
    %43 = vector.extract_strided_slice %41 {offsets = [0, 32], sizes = [8, 32], strides = [1, 1]} : vector<8x128xf32> to vector<8x32xf32>
    %44 = vector.extract_strided_slice %41 {offsets = [0, 64], sizes = [8, 32], strides = [1, 1]} : vector<8x128xf32> to vector<8x32xf32>
    %45 = vector.extract_strided_slice %36 {offsets = [0, 96], sizes = [8, 32], strides = [1, 1]} : vector<8x128xf32> to vector<8x32xf32>
    %46 = math.tanh %45 : vector<8x32xf32>
    %47 = arith.mulf %43, %15 : vector<8x32xf32>
    %48 = arith.mulf %42, %46 : vector<8x32xf32>
    %49 = arith.addf %47, %48 : vector<8x32xf32>
    %50 = math.tanh %49 : vector<8x32xf32>
    %51 = arith.mulf %44, %50 : vector<8x32xf32>
    %52 = tpu.concatenate %51, %15 in 1 : vector<8x32xf32>, vector<8x32xf32> -> vector<8x64xf32>
    %cst_20 = arith.constant dense<0.000000e+00> : vector<8x128xf32>
    %53 = tpu.matmul %52, %8, %cst_20 {dimension_numbers = #tpu.dot_dimension_numbers<[1], [0], [0], [1], [0, 0, 1, 1], [], []>} : vector<8x64xf32>, vector<64x128xf32>, vector<8x128xf32> -> vector<8x128xf32>
    %54 = arith.addf %53, %14 : vector<8x128xf32>
    %55 = arith.negf %54 : vector<8x128xf32>
    %56 = math.exp %55 : vector<8x128xf32>
    %cst_21 = arith.constant 1.000000e+00 : f32
    %57 = vector.broadcast %cst_21 : f32 to vector<8x128xf32>
    %58 = arith.addf %57, %56 : vector<8x128xf32>
    %59 = arith.divf %57, %58 : vector<8x128xf32>
    %60 = vector.extract_strided_slice %59 {offsets = [0, 0], sizes = [8, 32], strides = [1, 1]} : vector<8x128xf32> to vector<8x32xf32>
    %61 = vector.extract_strided_slice %59 {offsets = [0, 32], sizes = [8, 32], strides = [1, 1]} : vector<8x128xf32> to vector<8x32xf32>
    %62 = vector.extract_strided_slice %59 {offsets = [0, 64], sizes = [8, 32], strides = [1, 1]} : vector<8x128xf32> to vector<8x32xf32>
    %63 = vector.extract_strided_slice %54 {offsets = [0, 96], sizes = [8, 32], strides = [1, 1]} : vector<8x128xf32> to vector<8x32xf32>
    %64 = math.tanh %63 : vector<8x32xf32>
    %65 = arith.mulf %61, %15 : vector<8x32xf32>
    %66 = arith.mulf %60, %64 : vector<8x32xf32>
    %67 = arith.addf %65, %66 : vector<8x32xf32>
    %68 = math.tanh %67 : vector<8x32xf32>
    %69 = arith.mulf %62, %68 : vector<8x32xf32>
    %70 = vector.extract_strided_slice %5 {offsets = [8, 0], sizes = [8, 128], strides = [1, 1]} : vector<64x128xf32> to vector<8x128xf32>
    %cst_22 = arith.constant dense<0.000000e+00> : vector<8x128xf32>
    %71 = tpu.matmul %33, %6, %cst_22 {dimension_numbers = #tpu.dot_dimension_numbers<[1], [0], [0], [1], [0, 0, 1, 1], [], []>} : vector<8x32xf32>, vector<32x128xf32>, vector<8x128xf32> -> vector<8x128xf32>
    %72 = arith.addf %70, %71 : vector<8x128xf32>
    %73 = arith.negf %72 : vector<8x128xf32>
    %74 = math.exp %73 : vector<8x128xf32>
    %cst_23 = arith.constant 1.000000e+00 : f32
    %75 = vector.broadcast %cst_23 : f32 to vector<8x128xf32>
    %76 = arith.addf %75, %74 : vector<8x128xf32>
    %77 = arith.divf %75, %76 : vector<8x128xf32>
    %78 = vector.extract_strided_slice %77 {offsets = [0, 0], sizes = [8, 32], strides = [1, 1]} : vector<8x128xf32> to vector<8x32xf32>
    %79 = vector.extract_strided_slice %77 {offsets = [0, 32], sizes = [8, 32], strides = [1, 1]} : vector<8x128xf32> to vector<8x32xf32>
    %80 = vector.extract_strided_slice %77 {offsets = [0, 64], sizes = [8, 32], strides = [1, 1]} : vector<8x128xf32> to vector<8x32xf32>
    %81 = vector.extract_strided_slice %72 {offsets = [0, 96], sizes = [8, 32], strides = [1, 1]} : vector<8x128xf32> to vector<8x32xf32>
    %82 = math.tanh %81 : vector<8x32xf32>
    %83 = arith.mulf %79, %31 : vector<8x32xf32>
    %84 = arith.mulf %78, %82 : vector<8x32xf32>
    %85 = arith.addf %83, %84 : vector<8x32xf32>
    %86 = math.tanh %85 : vector<8x32xf32>
    %87 = arith.mulf %80, %86 : vector<8x32xf32>
    %88 = tpu.concatenate %87, %51 in 1 : vector<8x32xf32>, vector<8x32xf32> -> vector<8x64xf32>
    %cst_24 = arith.constant dense<0.000000e+00> : vector<8x128xf32>
    %89 = tpu.matmul %88, %7, %cst_24 {dimension_numbers = #tpu.dot_dimension_numbers<[1], [0], [0], [1], [0, 0, 1, 1], [], []>} : vector<8x64xf32>, vector<64x128xf32>, vector<8x128xf32> -> vector<8x128xf32>
    %90 = arith.addf %89, %11 : vector<8x128xf32>
    %91 = arith.negf %90 : vector<8x128xf32>
    %92 = math.exp %91 : vector<8x128xf32>
    %cst_25 = arith.constant 1.000000e+00 : f32
    %93 = vector.broadcast %cst_25 : f32 to vector<8x128xf32>
    %94 = arith.addf %93, %92 : vector<8x128xf32>
    %95 = arith.divf %93, %94 : vector<8x128xf32>
    %96 = vector.extract_strided_slice %95 {offsets = [0, 0], sizes = [8, 32], strides = [1, 1]} : vector<8x128xf32> to vector<8x32xf32>
    %97 = vector.extract_strided_slice %95 {offsets = [0, 32], sizes = [8, 32], strides = [1, 1]} : vector<8x128xf32> to vector<8x32xf32>
    %98 = vector.extract_strided_slice %95 {offsets = [0, 64], sizes = [8, 32], strides = [1, 1]} : vector<8x128xf32> to vector<8x32xf32>
    %99 = vector.extract_strided_slice %90 {offsets = [0, 96], sizes = [8, 32], strides = [1, 1]} : vector<8x128xf32> to vector<8x32xf32>
    %100 = math.tanh %99 : vector<8x32xf32>
    %101 = arith.mulf %97, %49 : vector<8x32xf32>
    %102 = arith.mulf %96, %100 : vector<8x32xf32>
    %103 = arith.addf %101, %102 : vector<8x32xf32>
    %104 = math.tanh %103 : vector<8x32xf32>
    %105 = arith.mulf %98, %104 : vector<8x32xf32>
    %106 = tpu.concatenate %105, %69 in 1 : vector<8x32xf32>, vector<8x32xf32> -> vector<8x64xf32>
    %cst_26 = arith.constant dense<0.000000e+00> : vector<8x128xf32>
    %107 = tpu.matmul %106, %8, %cst_26 {dimension_numbers = #tpu.dot_dimension_numbers<[1], [0], [0], [1], [0, 0, 1, 1], [], []>} : vector<8x64xf32>, vector<64x128xf32>, vector<8x128xf32> -> vector<8x128xf32>
    %108 = arith.addf %107, %14 : vector<8x128xf32>
    %109 = arith.negf %108 : vector<8x128xf32>
    %110 = math.exp %109 : vector<8x128xf32>
    %cst_27 = arith.constant 1.000000e+00 : f32
    %111 = vector.broadcast %cst_27 : f32 to vector<8x128xf32>
    %112 = arith.addf %111, %110 : vector<8x128xf32>
    %113 = arith.divf %111, %112 : vector<8x128xf32>
    %114 = vector.extract_strided_slice %113 {offsets = [0, 0], sizes = [8, 32], strides = [1, 1]} : vector<8x128xf32> to vector<8x32xf32>
    %115 = vector.extract_strided_slice %113 {offsets = [0, 32], sizes = [8, 32], strides = [1, 1]} : vector<8x128xf32> to vector<8x32xf32>
    %116 = vector.extract_strided_slice %113 {offsets = [0, 64], sizes = [8, 32], strides = [1, 1]} : vector<8x128xf32> to vector<8x32xf32>
    %117 = vector.extract_strided_slice %108 {offsets = [0, 96], sizes = [8, 32], strides = [1, 1]} : vector<8x128xf32> to vector<8x32xf32>
    %118 = math.tanh %117 : vector<8x32xf32>
    %119 = arith.mulf %115, %67 : vector<8x32xf32>
    %120 = arith.mulf %114, %118 : vector<8x32xf32>
    %121 = arith.addf %119, %120 : vector<8x32xf32>
    %122 = math.tanh %121 : vector<8x32xf32>
    %123 = arith.mulf %116, %122 : vector<8x32xf32>
    %124 = vector.extract_strided_slice %5 {offsets = [16, 0], sizes = [8, 128], strides = [1, 1]} : vector<64x128xf32> to vector<8x128xf32>
    %cst_28 = arith.constant dense<0.000000e+00> : vector<8x128xf32>
    %125 = tpu.matmul %87, %6, %cst_28 {dimension_numbers = #tpu.dot_dimension_numbers<[1], [0], [0], [1], [0, 0, 1, 1], [], []>} : vector<8x32xf32>, vector<32x128xf32>, vector<8x128xf32> -> vector<8x128xf32>
    %126 = arith.addf %124, %125 : vector<8x128xf32>
    %127 = arith.negf %126 : vector<8x128xf32>
    %128 = math.exp %127 : vector<8x128xf32>
    %cst_29 = arith.constant 1.000000e+00 : f32
    %129 = vector.broadcast %cst_29 : f32 to vector<8x128xf32>
    %130 = arith.addf %129, %128 : vector<8x128xf32>
    %131 = arith.divf %129, %130 : vector<8x128xf32>
    %132 = vector.extract_strided_slice %131 {offsets = [0, 0], sizes = [8, 32], strides = [1, 1]} : vector<8x128xf32> to vector<8x32xf32>
    %133 = vector.extract_strided_slice %131 {offsets = [0, 32], sizes = [8, 32], strides = [1, 1]} : vector<8x128xf32> to vector<8x32xf32>
    %134 = vector.extract_strided_slice %131 {offsets = [0, 64], sizes = [8, 32], strides = [1, 1]} : vector<8x128xf32> to vector<8x32xf32>
    %135 = vector.extract_strided_slice %126 {offsets = [0, 96], sizes = [8, 32], strides = [1, 1]} : vector<8x128xf32> to vector<8x32xf32>
    %136 = math.tanh %135 : vector<8x32xf32>
    %137 = arith.mulf %133, %85 : vector<8x32xf32>
    %138 = arith.mulf %132, %136 : vector<8x32xf32>
    %139 = arith.addf %137, %138 : vector<8x32xf32>
    %140 = math.tanh %139 : vector<8x32xf32>
    %141 = arith.mulf %134, %140 : vector<8x32xf32>
    %142 = tpu.concatenate %141, %105 in 1 : vector<8x32xf32>, vector<8x32xf32> -> vector<8x64xf32>
    %cst_30 = arith.constant dense<0.000000e+00> : vector<8x128xf32>
    %143 = tpu.matmul %142, %7, %cst_30 {dimension_numbers = #tpu.dot_dimension_numbers<[1], [0], [0], [1], [0, 0, 1, 1], [], []>} : vector<8x64xf32>, vector<64x128xf32>, vector<8x128xf32> -> vector<8x128xf32>
    %144 = arith.addf %143, %11 : vector<8x128xf32>
    %145 = arith.negf %144 : vector<8x128xf32>
    %146 = math.exp %145 : vector<8x128xf32>
    %cst_31 = arith.constant 1.000000e+00 : f32
    %147 = vector.broadcast %cst_31 : f32 to vector<8x128xf32>
    %148 = arith.addf %147, %146 : vector<8x128xf32>
    %149 = arith.divf %147, %148 : vector<8x128xf32>
    %150 = vector.extract_strided_slice %149 {offsets = [0, 0], sizes = [8, 32], strides = [1, 1]} : vector<8x128xf32> to vector<8x32xf32>
    %151 = vector.extract_strided_slice %149 {offsets = [0, 32], sizes = [8, 32], strides = [1, 1]} : vector<8x128xf32> to vector<8x32xf32>
    %152 = vector.extract_strided_slice %149 {offsets = [0, 64], sizes = [8, 32], strides = [1, 1]} : vector<8x128xf32> to vector<8x32xf32>
    %153 = vector.extract_strided_slice %144 {offsets = [0, 96], sizes = [8, 32], strides = [1, 1]} : vector<8x128xf32> to vector<8x32xf32>
    %154 = math.tanh %153 : vector<8x32xf32>
    %155 = arith.mulf %151, %103 : vector<8x32xf32>
    %156 = arith.mulf %150, %154 : vector<8x32xf32>
    %157 = arith.addf %155, %156 : vector<8x32xf32>
    %158 = math.tanh %157 : vector<8x32xf32>
    %159 = arith.mulf %152, %158 : vector<8x32xf32>
    %160 = tpu.concatenate %159, %123 in 1 : vector<8x32xf32>, vector<8x32xf32> -> vector<8x64xf32>
    %cst_32 = arith.constant dense<0.000000e+00> : vector<8x128xf32>
    %161 = tpu.matmul %160, %8, %cst_32 {dimension_numbers = #tpu.dot_dimension_numbers<[1], [0], [0], [1], [0, 0, 1, 1], [], []>} : vector<8x64xf32>, vector<64x128xf32>, vector<8x128xf32> -> vector<8x128xf32>
    %162 = arith.addf %161, %14 : vector<8x128xf32>
    %163 = arith.negf %162 : vector<8x128xf32>
    %164 = math.exp %163 : vector<8x128xf32>
    %cst_33 = arith.constant 1.000000e+00 : f32
    %165 = vector.broadcast %cst_33 : f32 to vector<8x128xf32>
    %166 = arith.addf %165, %164 : vector<8x128xf32>
    %167 = arith.divf %165, %166 : vector<8x128xf32>
    %168 = vector.extract_strided_slice %167 {offsets = [0, 0], sizes = [8, 32], strides = [1, 1]} : vector<8x128xf32> to vector<8x32xf32>
    %169 = vector.extract_strided_slice %167 {offsets = [0, 32], sizes = [8, 32], strides = [1, 1]} : vector<8x128xf32> to vector<8x32xf32>
    %170 = vector.extract_strided_slice %167 {offsets = [0, 64], sizes = [8, 32], strides = [1, 1]} : vector<8x128xf32> to vector<8x32xf32>
    %171 = vector.extract_strided_slice %162 {offsets = [0, 96], sizes = [8, 32], strides = [1, 1]} : vector<8x128xf32> to vector<8x32xf32>
    %172 = math.tanh %171 : vector<8x32xf32>
    %173 = arith.mulf %169, %121 : vector<8x32xf32>
    %174 = arith.mulf %168, %172 : vector<8x32xf32>
    %175 = arith.addf %173, %174 : vector<8x32xf32>
    %176 = math.tanh %175 : vector<8x32xf32>
    %177 = arith.mulf %170, %176 : vector<8x32xf32>
    %178 = vector.extract_strided_slice %5 {offsets = [24, 0], sizes = [8, 128], strides = [1, 1]} : vector<64x128xf32> to vector<8x128xf32>
    %cst_34 = arith.constant dense<0.000000e+00> : vector<8x128xf32>
    %179 = tpu.matmul %141, %6, %cst_34 {dimension_numbers = #tpu.dot_dimension_numbers<[1], [0], [0], [1], [0, 0, 1, 1], [], []>} : vector<8x32xf32>, vector<32x128xf32>, vector<8x128xf32> -> vector<8x128xf32>
    %180 = arith.addf %178, %179 : vector<8x128xf32>
    %181 = arith.negf %180 : vector<8x128xf32>
    %182 = math.exp %181 : vector<8x128xf32>
    %cst_35 = arith.constant 1.000000e+00 : f32
    %183 = vector.broadcast %cst_35 : f32 to vector<8x128xf32>
    %184 = arith.addf %183, %182 : vector<8x128xf32>
    %185 = arith.divf %183, %184 : vector<8x128xf32>
    %186 = vector.extract_strided_slice %185 {offsets = [0, 0], sizes = [8, 32], strides = [1, 1]} : vector<8x128xf32> to vector<8x32xf32>
    %187 = vector.extract_strided_slice %185 {offsets = [0, 32], sizes = [8, 32], strides = [1, 1]} : vector<8x128xf32> to vector<8x32xf32>
    %188 = vector.extract_strided_slice %185 {offsets = [0, 64], sizes = [8, 32], strides = [1, 1]} : vector<8x128xf32> to vector<8x32xf32>
    %189 = vector.extract_strided_slice %180 {offsets = [0, 96], sizes = [8, 32], strides = [1, 1]} : vector<8x128xf32> to vector<8x32xf32>
    %190 = math.tanh %189 : vector<8x32xf32>
    %191 = arith.mulf %187, %139 : vector<8x32xf32>
    %192 = arith.mulf %186, %190 : vector<8x32xf32>
    %193 = arith.addf %191, %192 : vector<8x32xf32>
    %194 = math.tanh %193 : vector<8x32xf32>
    %195 = arith.mulf %188, %194 : vector<8x32xf32>
    %196 = tpu.concatenate %195, %159 in 1 : vector<8x32xf32>, vector<8x32xf32> -> vector<8x64xf32>
    %cst_36 = arith.constant dense<0.000000e+00> : vector<8x128xf32>
    %197 = tpu.matmul %196, %7, %cst_36 {dimension_numbers = #tpu.dot_dimension_numbers<[1], [0], [0], [1], [0, 0, 1, 1], [], []>} : vector<8x64xf32>, vector<64x128xf32>, vector<8x128xf32> -> vector<8x128xf32>
    %198 = arith.addf %197, %11 : vector<8x128xf32>
    %199 = arith.negf %198 : vector<8x128xf32>
    %200 = math.exp %199 : vector<8x128xf32>
    %cst_37 = arith.constant 1.000000e+00 : f32
    %201 = vector.broadcast %cst_37 : f32 to vector<8x128xf32>
    %202 = arith.addf %201, %200 : vector<8x128xf32>
    %203 = arith.divf %201, %202 : vector<8x128xf32>
    %204 = vector.extract_strided_slice %203 {offsets = [0, 0], sizes = [8, 32], strides = [1, 1]} : vector<8x128xf32> to vector<8x32xf32>
    %205 = vector.extract_strided_slice %203 {offsets = [0, 32], sizes = [8, 32], strides = [1, 1]} : vector<8x128xf32> to vector<8x32xf32>
    %206 = vector.extract_strided_slice %203 {offsets = [0, 64], sizes = [8, 32], strides = [1, 1]} : vector<8x128xf32> to vector<8x32xf32>
    %207 = vector.extract_strided_slice %198 {offsets = [0, 96], sizes = [8, 32], strides = [1, 1]} : vector<8x128xf32> to vector<8x32xf32>
    %208 = math.tanh %207 : vector<8x32xf32>
    %209 = arith.mulf %205, %157 : vector<8x32xf32>
    %210 = arith.mulf %204, %208 : vector<8x32xf32>
    %211 = arith.addf %209, %210 : vector<8x32xf32>
    %212 = math.tanh %211 : vector<8x32xf32>
    %213 = arith.mulf %206, %212 : vector<8x32xf32>
    %214 = tpu.concatenate %213, %177 in 1 : vector<8x32xf32>, vector<8x32xf32> -> vector<8x64xf32>
    %cst_38 = arith.constant dense<0.000000e+00> : vector<8x128xf32>
    %215 = tpu.matmul %214, %8, %cst_38 {dimension_numbers = #tpu.dot_dimension_numbers<[1], [0], [0], [1], [0, 0, 1, 1], [], []>} : vector<8x64xf32>, vector<64x128xf32>, vector<8x128xf32> -> vector<8x128xf32>
    %216 = arith.addf %215, %14 : vector<8x128xf32>
    %217 = arith.negf %216 : vector<8x128xf32>
    %218 = math.exp %217 : vector<8x128xf32>
    %cst_39 = arith.constant 1.000000e+00 : f32
    %219 = vector.broadcast %cst_39 : f32 to vector<8x128xf32>
    %220 = arith.addf %219, %218 : vector<8x128xf32>
    %221 = arith.divf %219, %220 : vector<8x128xf32>
    %222 = vector.extract_strided_slice %221 {offsets = [0, 0], sizes = [8, 32], strides = [1, 1]} : vector<8x128xf32> to vector<8x32xf32>
    %223 = vector.extract_strided_slice %221 {offsets = [0, 32], sizes = [8, 32], strides = [1, 1]} : vector<8x128xf32> to vector<8x32xf32>
    %224 = vector.extract_strided_slice %221 {offsets = [0, 64], sizes = [8, 32], strides = [1, 1]} : vector<8x128xf32> to vector<8x32xf32>
    %225 = vector.extract_strided_slice %216 {offsets = [0, 96], sizes = [8, 32], strides = [1, 1]} : vector<8x128xf32> to vector<8x32xf32>
    %226 = math.tanh %225 : vector<8x32xf32>
    %227 = arith.mulf %223, %175 : vector<8x32xf32>
    %228 = arith.mulf %222, %226 : vector<8x32xf32>
    %229 = arith.addf %227, %228 : vector<8x32xf32>
    %230 = math.tanh %229 : vector<8x32xf32>
    %231 = arith.mulf %224, %230 : vector<8x32xf32>
    %232 = vector.extract_strided_slice %5 {offsets = [32, 0], sizes = [8, 128], strides = [1, 1]} : vector<64x128xf32> to vector<8x128xf32>
    %cst_40 = arith.constant dense<0.000000e+00> : vector<8x128xf32>
    %233 = tpu.matmul %195, %6, %cst_40 {dimension_numbers = #tpu.dot_dimension_numbers<[1], [0], [0], [1], [0, 0, 1, 1], [], []>} : vector<8x32xf32>, vector<32x128xf32>, vector<8x128xf32> -> vector<8x128xf32>
    %234 = arith.addf %232, %233 : vector<8x128xf32>
    %235 = arith.negf %234 : vector<8x128xf32>
    %236 = math.exp %235 : vector<8x128xf32>
    %cst_41 = arith.constant 1.000000e+00 : f32
    %237 = vector.broadcast %cst_41 : f32 to vector<8x128xf32>
    %238 = arith.addf %237, %236 : vector<8x128xf32>
    %239 = arith.divf %237, %238 : vector<8x128xf32>
    %240 = vector.extract_strided_slice %239 {offsets = [0, 0], sizes = [8, 32], strides = [1, 1]} : vector<8x128xf32> to vector<8x32xf32>
    %241 = vector.extract_strided_slice %239 {offsets = [0, 32], sizes = [8, 32], strides = [1, 1]} : vector<8x128xf32> to vector<8x32xf32>
    %242 = vector.extract_strided_slice %239 {offsets = [0, 64], sizes = [8, 32], strides = [1, 1]} : vector<8x128xf32> to vector<8x32xf32>
    %243 = vector.extract_strided_slice %234 {offsets = [0, 96], sizes = [8, 32], strides = [1, 1]} : vector<8x128xf32> to vector<8x32xf32>
    %244 = math.tanh %243 : vector<8x32xf32>
    %245 = arith.mulf %241, %193 : vector<8x32xf32>
    %246 = arith.mulf %240, %244 : vector<8x32xf32>
    %247 = arith.addf %245, %246 : vector<8x32xf32>
    %248 = math.tanh %247 : vector<8x32xf32>
    %249 = arith.mulf %242, %248 : vector<8x32xf32>
    %250 = tpu.concatenate %249, %213 in 1 : vector<8x32xf32>, vector<8x32xf32> -> vector<8x64xf32>
    %cst_42 = arith.constant dense<0.000000e+00> : vector<8x128xf32>
    %251 = tpu.matmul %250, %7, %cst_42 {dimension_numbers = #tpu.dot_dimension_numbers<[1], [0], [0], [1], [0, 0, 1, 1], [], []>} : vector<8x64xf32>, vector<64x128xf32>, vector<8x128xf32> -> vector<8x128xf32>
    %252 = arith.addf %251, %11 : vector<8x128xf32>
    %253 = arith.negf %252 : vector<8x128xf32>
    %254 = math.exp %253 : vector<8x128xf32>
    %cst_43 = arith.constant 1.000000e+00 : f32
    %255 = vector.broadcast %cst_43 : f32 to vector<8x128xf32>
    %256 = arith.addf %255, %254 : vector<8x128xf32>
    %257 = arith.divf %255, %256 : vector<8x128xf32>
    %258 = vector.extract_strided_slice %257 {offsets = [0, 0], sizes = [8, 32], strides = [1, 1]} : vector<8x128xf32> to vector<8x32xf32>
    %259 = vector.extract_strided_slice %257 {offsets = [0, 32], sizes = [8, 32], strides = [1, 1]} : vector<8x128xf32> to vector<8x32xf32>
    %260 = vector.extract_strided_slice %257 {offsets = [0, 64], sizes = [8, 32], strides = [1, 1]} : vector<8x128xf32> to vector<8x32xf32>
    %261 = vector.extract_strided_slice %252 {offsets = [0, 96], sizes = [8, 32], strides = [1, 1]} : vector<8x128xf32> to vector<8x32xf32>
    %262 = math.tanh %261 : vector<8x32xf32>
    %263 = arith.mulf %259, %211 : vector<8x32xf32>
    %264 = arith.mulf %258, %262 : vector<8x32xf32>
    %265 = arith.addf %263, %264 : vector<8x32xf32>
    %266 = math.tanh %265 : vector<8x32xf32>
    %267 = arith.mulf %260, %266 : vector<8x32xf32>
    %268 = tpu.concatenate %267, %231 in 1 : vector<8x32xf32>, vector<8x32xf32> -> vector<8x64xf32>
    %cst_44 = arith.constant dense<0.000000e+00> : vector<8x128xf32>
    %269 = tpu.matmul %268, %8, %cst_44 {dimension_numbers = #tpu.dot_dimension_numbers<[1], [0], [0], [1], [0, 0, 1, 1], [], []>} : vector<8x64xf32>, vector<64x128xf32>, vector<8x128xf32> -> vector<8x128xf32>
    %270 = arith.addf %269, %14 : vector<8x128xf32>
    %271 = arith.negf %270 : vector<8x128xf32>
    %272 = math.exp %271 : vector<8x128xf32>
    %cst_45 = arith.constant 1.000000e+00 : f32
    %273 = vector.broadcast %cst_45 : f32 to vector<8x128xf32>
    %274 = arith.addf %273, %272 : vector<8x128xf32>
    %275 = arith.divf %273, %274 : vector<8x128xf32>
    %276 = vector.extract_strided_slice %275 {offsets = [0, 0], sizes = [8, 32], strides = [1, 1]} : vector<8x128xf32> to vector<8x32xf32>
    %277 = vector.extract_strided_slice %275 {offsets = [0, 32], sizes = [8, 32], strides = [1, 1]} : vector<8x128xf32> to vector<8x32xf32>
    %278 = vector.extract_strided_slice %275 {offsets = [0, 64], sizes = [8, 32], strides = [1, 1]} : vector<8x128xf32> to vector<8x32xf32>
    %279 = vector.extract_strided_slice %270 {offsets = [0, 96], sizes = [8, 32], strides = [1, 1]} : vector<8x128xf32> to vector<8x32xf32>
    %280 = math.tanh %279 : vector<8x32xf32>
    %281 = arith.mulf %277, %229 : vector<8x32xf32>
    %282 = arith.mulf %276, %280 : vector<8x32xf32>
    %283 = arith.addf %281, %282 : vector<8x32xf32>
    %284 = math.tanh %283 : vector<8x32xf32>
    %285 = arith.mulf %278, %284 : vector<8x32xf32>
    %286 = vector.extract_strided_slice %5 {offsets = [40, 0], sizes = [8, 128], strides = [1, 1]} : vector<64x128xf32> to vector<8x128xf32>
    %cst_46 = arith.constant dense<0.000000e+00> : vector<8x128xf32>
    %287 = tpu.matmul %249, %6, %cst_46 {dimension_numbers = #tpu.dot_dimension_numbers<[1], [0], [0], [1], [0, 0, 1, 1], [], []>} : vector<8x32xf32>, vector<32x128xf32>, vector<8x128xf32> -> vector<8x128xf32>
    %288 = arith.addf %286, %287 : vector<8x128xf32>
    %289 = arith.negf %288 : vector<8x128xf32>
    %290 = math.exp %289 : vector<8x128xf32>
    %cst_47 = arith.constant 1.000000e+00 : f32
    %291 = vector.broadcast %cst_47 : f32 to vector<8x128xf32>
    %292 = arith.addf %291, %290 : vector<8x128xf32>
    %293 = arith.divf %291, %292 : vector<8x128xf32>
    %294 = vector.extract_strided_slice %293 {offsets = [0, 0], sizes = [8, 32], strides = [1, 1]} : vector<8x128xf32> to vector<8x32xf32>
    %295 = vector.extract_strided_slice %293 {offsets = [0, 32], sizes = [8, 32], strides = [1, 1]} : vector<8x128xf32> to vector<8x32xf32>
    %296 = vector.extract_strided_slice %293 {offsets = [0, 64], sizes = [8, 32], strides = [1, 1]} : vector<8x128xf32> to vector<8x32xf32>
    %297 = vector.extract_strided_slice %288 {offsets = [0, 96], sizes = [8, 32], strides = [1, 1]} : vector<8x128xf32> to vector<8x32xf32>
    %298 = math.tanh %297 : vector<8x32xf32>
    %299 = arith.mulf %295, %247 : vector<8x32xf32>
    %300 = arith.mulf %294, %298 : vector<8x32xf32>
    %301 = arith.addf %299, %300 : vector<8x32xf32>
    %302 = math.tanh %301 : vector<8x32xf32>
    %303 = arith.mulf %296, %302 : vector<8x32xf32>
    %304 = tpu.concatenate %303, %267 in 1 : vector<8x32xf32>, vector<8x32xf32> -> vector<8x64xf32>
    %cst_48 = arith.constant dense<0.000000e+00> : vector<8x128xf32>
    %305 = tpu.matmul %304, %7, %cst_48 {dimension_numbers = #tpu.dot_dimension_numbers<[1], [0], [0], [1], [0, 0, 1, 1], [], []>} : vector<8x64xf32>, vector<64x128xf32>, vector<8x128xf32> -> vector<8x128xf32>
    %306 = arith.addf %305, %11 : vector<8x128xf32>
    %307 = arith.negf %306 : vector<8x128xf32>
    %308 = math.exp %307 : vector<8x128xf32>
    %cst_49 = arith.constant 1.000000e+00 : f32
    %309 = vector.broadcast %cst_49 : f32 to vector<8x128xf32>
    %310 = arith.addf %309, %308 : vector<8x128xf32>
    %311 = arith.divf %309, %310 : vector<8x128xf32>
    %312 = vector.extract_strided_slice %311 {offsets = [0, 0], sizes = [8, 32], strides = [1, 1]} : vector<8x128xf32> to vector<8x32xf32>
    %313 = vector.extract_strided_slice %311 {offsets = [0, 32], sizes = [8, 32], strides = [1, 1]} : vector<8x128xf32> to vector<8x32xf32>
    %314 = vector.extract_strided_slice %311 {offsets = [0, 64], sizes = [8, 32], strides = [1, 1]} : vector<8x128xf32> to vector<8x32xf32>
    %315 = vector.extract_strided_slice %306 {offsets = [0, 96], sizes = [8, 32], strides = [1, 1]} : vector<8x128xf32> to vector<8x32xf32>
    %316 = math.tanh %315 : vector<8x32xf32>
    %317 = arith.mulf %313, %265 : vector<8x32xf32>
    %318 = arith.mulf %312, %316 : vector<8x32xf32>
    %319 = arith.addf %317, %318 : vector<8x32xf32>
    %320 = math.tanh %319 : vector<8x32xf32>
    %321 = arith.mulf %314, %320 : vector<8x32xf32>
    %322 = tpu.concatenate %321, %285 in 1 : vector<8x32xf32>, vector<8x32xf32> -> vector<8x64xf32>
    %cst_50 = arith.constant dense<0.000000e+00> : vector<8x128xf32>
    %323 = tpu.matmul %322, %8, %cst_50 {dimension_numbers = #tpu.dot_dimension_numbers<[1], [0], [0], [1], [0, 0, 1, 1], [], []>} : vector<8x64xf32>, vector<64x128xf32>, vector<8x128xf32> -> vector<8x128xf32>
    %324 = arith.addf %323, %14 : vector<8x128xf32>
    %325 = arith.negf %324 : vector<8x128xf32>
    %326 = math.exp %325 : vector<8x128xf32>
    %cst_51 = arith.constant 1.000000e+00 : f32
    %327 = vector.broadcast %cst_51 : f32 to vector<8x128xf32>
    %328 = arith.addf %327, %326 : vector<8x128xf32>
    %329 = arith.divf %327, %328 : vector<8x128xf32>
    %330 = vector.extract_strided_slice %329 {offsets = [0, 0], sizes = [8, 32], strides = [1, 1]} : vector<8x128xf32> to vector<8x32xf32>
    %331 = vector.extract_strided_slice %329 {offsets = [0, 32], sizes = [8, 32], strides = [1, 1]} : vector<8x128xf32> to vector<8x32xf32>
    %332 = vector.extract_strided_slice %329 {offsets = [0, 64], sizes = [8, 32], strides = [1, 1]} : vector<8x128xf32> to vector<8x32xf32>
    %333 = vector.extract_strided_slice %324 {offsets = [0, 96], sizes = [8, 32], strides = [1, 1]} : vector<8x128xf32> to vector<8x32xf32>
    %334 = math.tanh %333 : vector<8x32xf32>
    %335 = arith.mulf %331, %283 : vector<8x32xf32>
    %336 = arith.mulf %330, %334 : vector<8x32xf32>
    %337 = arith.addf %335, %336 : vector<8x32xf32>
    %338 = math.tanh %337 : vector<8x32xf32>
    %339 = arith.mulf %332, %338 : vector<8x32xf32>
    %340 = vector.extract_strided_slice %5 {offsets = [48, 0], sizes = [8, 128], strides = [1, 1]} : vector<64x128xf32> to vector<8x128xf32>
    %cst_52 = arith.constant dense<0.000000e+00> : vector<8x128xf32>
    %341 = tpu.matmul %303, %6, %cst_52 {dimension_numbers = #tpu.dot_dimension_numbers<[1], [0], [0], [1], [0, 0, 1, 1], [], []>} : vector<8x32xf32>, vector<32x128xf32>, vector<8x128xf32> -> vector<8x128xf32>
    %342 = arith.addf %340, %341 : vector<8x128xf32>
    %343 = arith.negf %342 : vector<8x128xf32>
    %344 = math.exp %343 : vector<8x128xf32>
    %cst_53 = arith.constant 1.000000e+00 : f32
    %345 = vector.broadcast %cst_53 : f32 to vector<8x128xf32>
    %346 = arith.addf %345, %344 : vector<8x128xf32>
    %347 = arith.divf %345, %346 : vector<8x128xf32>
    %348 = vector.extract_strided_slice %347 {offsets = [0, 0], sizes = [8, 32], strides = [1, 1]} : vector<8x128xf32> to vector<8x32xf32>
    %349 = vector.extract_strided_slice %347 {offsets = [0, 32], sizes = [8, 32], strides = [1, 1]} : vector<8x128xf32> to vector<8x32xf32>
    %350 = vector.extract_strided_slice %347 {offsets = [0, 64], sizes = [8, 32], strides = [1, 1]} : vector<8x128xf32> to vector<8x32xf32>
    %351 = vector.extract_strided_slice %342 {offsets = [0, 96], sizes = [8, 32], strides = [1, 1]} : vector<8x128xf32> to vector<8x32xf32>
    %352 = math.tanh %351 : vector<8x32xf32>
    %353 = arith.mulf %349, %301 : vector<8x32xf32>
    %354 = arith.mulf %348, %352 : vector<8x32xf32>
    %355 = arith.addf %353, %354 : vector<8x32xf32>
    %356 = math.tanh %355 : vector<8x32xf32>
    %357 = arith.mulf %350, %356 : vector<8x32xf32>
    %358 = tpu.concatenate %357, %321 in 1 : vector<8x32xf32>, vector<8x32xf32> -> vector<8x64xf32>
    %cst_54 = arith.constant dense<0.000000e+00> : vector<8x128xf32>
    %359 = tpu.matmul %358, %7, %cst_54 {dimension_numbers = #tpu.dot_dimension_numbers<[1], [0], [0], [1], [0, 0, 1, 1], [], []>} : vector<8x64xf32>, vector<64x128xf32>, vector<8x128xf32> -> vector<8x128xf32>
    %360 = arith.addf %359, %11 : vector<8x128xf32>
    %361 = arith.negf %360 : vector<8x128xf32>
    %362 = math.exp %361 : vector<8x128xf32>
    %cst_55 = arith.constant 1.000000e+00 : f32
    %363 = vector.broadcast %cst_55 : f32 to vector<8x128xf32>
    %364 = arith.addf %363, %362 : vector<8x128xf32>
    %365 = arith.divf %363, %364 : vector<8x128xf32>
    %366 = vector.extract_strided_slice %365 {offsets = [0, 0], sizes = [8, 32], strides = [1, 1]} : vector<8x128xf32> to vector<8x32xf32>
    %367 = vector.extract_strided_slice %365 {offsets = [0, 32], sizes = [8, 32], strides = [1, 1]} : vector<8x128xf32> to vector<8x32xf32>
    %368 = vector.extract_strided_slice %365 {offsets = [0, 64], sizes = [8, 32], strides = [1, 1]} : vector<8x128xf32> to vector<8x32xf32>
    %369 = vector.extract_strided_slice %360 {offsets = [0, 96], sizes = [8, 32], strides = [1, 1]} : vector<8x128xf32> to vector<8x32xf32>
    %370 = math.tanh %369 : vector<8x32xf32>
    %371 = arith.mulf %367, %319 : vector<8x32xf32>
    %372 = arith.mulf %366, %370 : vector<8x32xf32>
    %373 = arith.addf %371, %372 : vector<8x32xf32>
    %374 = math.tanh %373 : vector<8x32xf32>
    %375 = arith.mulf %368, %374 : vector<8x32xf32>
    %376 = tpu.concatenate %375, %339 in 1 : vector<8x32xf32>, vector<8x32xf32> -> vector<8x64xf32>
    %cst_56 = arith.constant dense<0.000000e+00> : vector<8x128xf32>
    %377 = tpu.matmul %376, %8, %cst_56 {dimension_numbers = #tpu.dot_dimension_numbers<[1], [0], [0], [1], [0, 0, 1, 1], [], []>} : vector<8x64xf32>, vector<64x128xf32>, vector<8x128xf32> -> vector<8x128xf32>
    %378 = arith.addf %377, %14 : vector<8x128xf32>
    %379 = arith.negf %378 : vector<8x128xf32>
    %380 = math.exp %379 : vector<8x128xf32>
    %cst_57 = arith.constant 1.000000e+00 : f32
    %381 = vector.broadcast %cst_57 : f32 to vector<8x128xf32>
    %382 = arith.addf %381, %380 : vector<8x128xf32>
    %383 = arith.divf %381, %382 : vector<8x128xf32>
    %384 = vector.extract_strided_slice %383 {offsets = [0, 0], sizes = [8, 32], strides = [1, 1]} : vector<8x128xf32> to vector<8x32xf32>
    %385 = vector.extract_strided_slice %383 {offsets = [0, 32], sizes = [8, 32], strides = [1, 1]} : vector<8x128xf32> to vector<8x32xf32>
    %386 = vector.extract_strided_slice %383 {offsets = [0, 64], sizes = [8, 32], strides = [1, 1]} : vector<8x128xf32> to vector<8x32xf32>
    %387 = vector.extract_strided_slice %378 {offsets = [0, 96], sizes = [8, 32], strides = [1, 1]} : vector<8x128xf32> to vector<8x32xf32>
    %388 = math.tanh %387 : vector<8x32xf32>
    %389 = arith.mulf %385, %337 : vector<8x32xf32>
    %390 = arith.mulf %384, %388 : vector<8x32xf32>
    %391 = arith.addf %389, %390 : vector<8x32xf32>
    %392 = math.tanh %391 : vector<8x32xf32>
    %393 = arith.mulf %386, %392 : vector<8x32xf32>
    %394 = vector.extract_strided_slice %5 {offsets = [56, 0], sizes = [8, 128], strides = [1, 1]} : vector<64x128xf32> to vector<8x128xf32>
    %cst_58 = arith.constant dense<0.000000e+00> : vector<8x128xf32>
    %395 = tpu.matmul %357, %6, %cst_58 {dimension_numbers = #tpu.dot_dimension_numbers<[1], [0], [0], [1], [0, 0, 1, 1], [], []>} : vector<8x32xf32>, vector<32x128xf32>, vector<8x128xf32> -> vector<8x128xf32>
    %396 = arith.addf %394, %395 : vector<8x128xf32>
    %397 = arith.negf %396 : vector<8x128xf32>
    %398 = math.exp %397 : vector<8x128xf32>
    %cst_59 = arith.constant 1.000000e+00 : f32
    %399 = vector.broadcast %cst_59 : f32 to vector<8x128xf32>
    %400 = arith.addf %399, %398 : vector<8x128xf32>
    %401 = arith.divf %399, %400 : vector<8x128xf32>
    %402 = vector.extract_strided_slice %401 {offsets = [0, 0], sizes = [8, 32], strides = [1, 1]} : vector<8x128xf32> to vector<8x32xf32>
    %403 = vector.extract_strided_slice %401 {offsets = [0, 32], sizes = [8, 32], strides = [1, 1]} : vector<8x128xf32> to vector<8x32xf32>
    %404 = vector.extract_strided_slice %401 {offsets = [0, 64], sizes = [8, 32], strides = [1, 1]} : vector<8x128xf32> to vector<8x32xf32>
    %405 = vector.extract_strided_slice %396 {offsets = [0, 96], sizes = [8, 32], strides = [1, 1]} : vector<8x128xf32> to vector<8x32xf32>
    %406 = math.tanh %405 : vector<8x32xf32>
    %407 = arith.mulf %403, %355 : vector<8x32xf32>
    %408 = arith.mulf %402, %406 : vector<8x32xf32>
    %409 = arith.addf %407, %408 : vector<8x32xf32>
    %410 = math.tanh %409 : vector<8x32xf32>
    %411 = arith.mulf %404, %410 : vector<8x32xf32>
    %412 = tpu.concatenate %411, %375 in 1 : vector<8x32xf32>, vector<8x32xf32> -> vector<8x64xf32>
    %cst_60 = arith.constant dense<0.000000e+00> : vector<8x128xf32>
    %413 = tpu.matmul %412, %7, %cst_60 {dimension_numbers = #tpu.dot_dimension_numbers<[1], [0], [0], [1], [0, 0, 1, 1], [], []>} : vector<8x64xf32>, vector<64x128xf32>, vector<8x128xf32> -> vector<8x128xf32>
    %414 = arith.addf %413, %11 : vector<8x128xf32>
    %415 = arith.negf %414 : vector<8x128xf32>
    %416 = math.exp %415 : vector<8x128xf32>
    %cst_61 = arith.constant 1.000000e+00 : f32
    %417 = vector.broadcast %cst_61 : f32 to vector<8x128xf32>
    %418 = arith.addf %417, %416 : vector<8x128xf32>
    %419 = arith.divf %417, %418 : vector<8x128xf32>
    %420 = vector.extract_strided_slice %419 {offsets = [0, 0], sizes = [8, 32], strides = [1, 1]} : vector<8x128xf32> to vector<8x32xf32>
    %421 = vector.extract_strided_slice %419 {offsets = [0, 32], sizes = [8, 32], strides = [1, 1]} : vector<8x128xf32> to vector<8x32xf32>
    %422 = vector.extract_strided_slice %419 {offsets = [0, 64], sizes = [8, 32], strides = [1, 1]} : vector<8x128xf32> to vector<8x32xf32>
    %423 = vector.extract_strided_slice %414 {offsets = [0, 96], sizes = [8, 32], strides = [1, 1]} : vector<8x128xf32> to vector<8x32xf32>
    %424 = math.tanh %423 : vector<8x32xf32>
    %425 = arith.mulf %421, %373 : vector<8x32xf32>
    %426 = arith.mulf %420, %424 : vector<8x32xf32>
    %427 = arith.addf %425, %426 : vector<8x32xf32>
    %428 = math.tanh %427 : vector<8x32xf32>
    %429 = arith.mulf %422, %428 : vector<8x32xf32>
    %430 = tpu.concatenate %429, %393 in 1 : vector<8x32xf32>, vector<8x32xf32> -> vector<8x64xf32>
    %cst_62 = arith.constant dense<0.000000e+00> : vector<8x128xf32>
    %431 = tpu.matmul %430, %8, %cst_62 {dimension_numbers = #tpu.dot_dimension_numbers<[1], [0], [0], [1], [0, 0, 1, 1], [], []>} : vector<8x64xf32>, vector<64x128xf32>, vector<8x128xf32> -> vector<8x128xf32>
    %432 = arith.addf %431, %14 : vector<8x128xf32>
    %433 = arith.negf %432 : vector<8x128xf32>
    %434 = math.exp %433 : vector<8x128xf32>
    %cst_63 = arith.constant 1.000000e+00 : f32
    %435 = vector.broadcast %cst_63 : f32 to vector<8x128xf32>
    %436 = arith.addf %435, %434 : vector<8x128xf32>
    %437 = arith.divf %435, %436 : vector<8x128xf32>
    %438 = vector.extract_strided_slice %437 {offsets = [0, 0], sizes = [8, 32], strides = [1, 1]} : vector<8x128xf32> to vector<8x32xf32>
    %439 = vector.extract_strided_slice %437 {offsets = [0, 32], sizes = [8, 32], strides = [1, 1]} : vector<8x128xf32> to vector<8x32xf32>
    %440 = vector.extract_strided_slice %437 {offsets = [0, 64], sizes = [8, 32], strides = [1, 1]} : vector<8x128xf32> to vector<8x32xf32>
    %441 = vector.extract_strided_slice %432 {offsets = [0, 96], sizes = [8, 32], strides = [1, 1]} : vector<8x128xf32> to vector<8x32xf32>
    %442 = math.tanh %441 : vector<8x32xf32>
    %443 = arith.mulf %439, %391 : vector<8x32xf32>
    %444 = arith.mulf %438, %442 : vector<8x32xf32>
    %445 = arith.addf %443, %444 : vector<8x32xf32>
    %446 = math.tanh %445 : vector<8x32xf32>
    %447 = arith.mulf %440, %446 : vector<8x32xf32>
    %c0_64 = arith.constant 0 : index
    %c0_65 = arith.constant 0 : index
    %448 = vector.load %arg8[%c0_64, %c0_65] : memref<32x256xf32, #tpu.memory_space<vmem>>, vector<32x256xf32>
    %cst_66 = arith.constant dense<0.000000e+00> : vector<8x256xf32>
    %449 = tpu.matmul %447, %448, %cst_66 {dimension_numbers = #tpu.dot_dimension_numbers<[1], [0], [0], [1], [0, 0, 1, 1], [], []>} : vector<8x32xf32>, vector<32x256xf32>, vector<8x256xf32> -> vector<8x256xf32>
    %c0_67 = arith.constant 0 : index
    %c0_68 = arith.constant 0 : index
    %450 = vector.load %arg9[%c0_67, %c0_68] : memref<1x256xf32, #tpu.memory_space<vmem>>, vector<1x256xf32>
    %451 = vector.broadcast %450 : vector<1x256xf32> to vector<8x256xf32>
    %452 = arith.addf %449, %451 : vector<8x256xf32>
    %cst_69 = arith.constant 0.000000e+00 : f32
    %453 = vector.broadcast %cst_69 : f32 to vector<8x256xf32>
    %454 = arith.maximumf %452, %453 : vector<8x256xf32>
    %c0_70 = arith.constant 0 : index
    %c0_71 = arith.constant 0 : index
    %455 = vector.load %arg10[%c0_70, %c0_71] : memref<1x256xf32, #tpu.memory_space<vmem>>, vector<1x256xf32>
    %456 = vector.broadcast %455 : vector<1x256xf32> to vector<8x256xf32>
    %457 = arith.mulf %454, %456 : vector<8x256xf32>
    %cst_72 = arith.constant dense<0.000000e+00> : vector<8xf32>
    %458 = vector.multi_reduction <add>, %457, %cst_72 [1] : vector<8x256xf32> to vector<8xf32>
    %459 = vector.shape_cast %458 : vector<8xf32> to vector<8x1xf32>
    %c0_73 = arith.constant 0 : index
    %c0_74 = arith.constant 0 : index
    %460 = vector.load %arg11[%c0_73, %c0_74] : memref<1x1xf32, #tpu.memory_space<vmem>>, vector<1x1xf32>
    %461 = vector.broadcast %460 : vector<1x1xf32> to vector<8x1xf32>
    %462 = arith.addf %459, %461 : vector<8x1xf32>
    %463 = arith.negf %462 : vector<8x1xf32>
    %464 = math.exp %463 : vector<8x1xf32>
    %cst_75 = arith.constant 1.000000e+00 : f32
    %465 = vector.broadcast %cst_75 : f32 to vector<8x1xf32>
    %466 = arith.addf %465, %464 : vector<8x1xf32>
    %467 = arith.divf %465, %466 : vector<8x1xf32>
    %c0_76 = arith.constant 0 : index
    %c0_77 = arith.constant 0 : index
    %468 = vector.load %arg12[%c0_76, %c0_77] : memref<8x1xf32, #tpu.memory_space<vmem>>, vector<8x1xf32>
    tpu.vector_store %arg12[%c0_76, %c0_77], %467 {strides = array<i32>} : memref<8x1xf32, #tpu.memory_space<vmem>>, vector<8x1xf32>,
    return
  }
}

</mosaic_0001>

<bundles_post_ra>
// kernel: tpu_custom_call.1
= control target key start
LH: loop header
LB: loop body
LE: loop exit
PB: predicated region body
PF: predicated region fallthrough
CT: control target
= control target key end

     0   :  { %s4840_s0 = inlined_call_operand.vmem [shape: f32[64,16], index: 0, kind: input, shape index: {}]   ;;  %s4841_s1 = inlined_call_operand.hbm [shape: f32[16,128], index: 1, kind: input, shape index: {}]   ;;  %s4842_s2 = inlined_call_operand.vmem [shape: f32[32,128], index: 2, kind: input, shape index: {}]   ;;  %s4843_s3 = inlined_call_operand.hbm [shape: f32[1,128], index: 3, kind: input, shape index: {}]   ;;  %s4844_s4 = inlined_call_operand.vmem [shape: f32[64,128], index: 4, kind: input, shape index: {}]   ;;  %s4845_s5 = inlined_call_operand.vmem [shape: f32[1,128], index: 5, kind: input, shape index: {}]   ;;  %s4846_s6 = inlined_call_operand.hbm [shape: f32[64,128], index: 6, kind: input, shape index: {}]   ;;  %s4847_s7 = inlined_call_operand.vmem [shape: f32[1,128], index: 7, kind: input, shape index: {}]   ;;  %s4848_s8 = inlined_call_operand.hbm [shape: f32[32,256], index: 8, kind: input, shape index: {}]   ;;  %s4849_s9 = inlined_call_operand.vmem [shape: f32[1,256], index: 9, kind: input, shape index: {}]   ;;  %s4850_s10 = inlined_call_operand.vmem [shape: f32[1,256], index: 10, kind: input, shape index: {}]   ;;  %s4851_s11 = inlined_call_operand.<no memory space> [shape: f32[1,1], index: 11, kind: input, shape index: {}]   ;;  %s4852_s12 = inlined_call_operand.vmem [shape: f32[8,1], index: 12, kind: output, shape index: {}]  }
   0x1   :  { %v17_v0 = vstv %s4851_s11 }
   0x2   :  { %18 = vst [vmem:[#allocation2] sm:$0x1] %v17_v0 }
   0x3   :  { %19 = vsyncpa [#allocation4], 0 }
   0x4   :  { %20 = vsyncpa [#allocation6], 0 }
   0x5   :  { %21 = vsyncpa [#allocation9], 0  ;;  %s4097_s23 = smov [#allocation5]   ;;  %s4098_s25 = smov [#allocation3]  }
   0x6   :  { %s44_s24 = sshll.u32 %s4097_s23, 4  ;;  %s29_s26 = sshll.u32 %s4098_s25, 4  ;;  %s45_s24 = int_to_ptr.vmem [resolvable:$true] %s44_s24  ;;  %s4179_s26 = int_to_ptr.vmem [resolvable:$true] %s29_s26 }
   0x7   :  { %s4003_s29 = scalar_lea.hbm %s4843_s3, 16 }
   0x8   :  { %p4004_p0 = scmp.ne.s32.totalorder %s4843_s3, %s4003_s29  ;;  %p4007_p1 = scmp.lt.u32.totalorder %s4003_s29, %s4843_s3 }
   0xa   :  { %p4009_p2 = pnand %p4007_p1, %p4004_p0 }
   0xc   :  { %4012 = shalt.err (!%p4009_p2)
}
   0xd   :  { %s4013_s15 = scalar_lea.vmem %s45_s24, 16  ;;  %s4017_s16 = scalar_lea.vmem %s45_s24, 32 }
   0xe   :  { %p4014_p3 = scmp.ne.s32.totalorder %s45_s24, %s4013_s15  ;;  %p4018_p4 = scmp.lt.s32.totalorder %s45_s24, %s45_s24 }
   0xf   :  { %p4019_p5 = scmp.lt.s32.totalorder %s4017_s16, %s4013_s15 }
  0x11   :  { %p4020_p6 = por %p4019_p5, %p4018_p4 }
  0x13   :  { %p4021_p7 = pnand %p4020_p6, %p4014_p3 }
  0x15   :  { %4024 = shalt.err (!%p4021_p7)
}
  0x16   :  { %47 = dma.hbm_to_vmem [thread:$0]  %s4843_s3, 16, %s45_s24, [#allocation6]  }
  0x17   :  { %s4025_s21 = scalar_lea.hbm %s4841_s1, 256 }
  0x18   :  { %p4026_p8 = scmp.ne.s32.totalorder %s4841_s1, %s4025_s21  ;;  %p4029_p9 = scmp.lt.u32.totalorder %s4025_s21, %s4841_s1 }
  0x1a   :  { %p4031_p10 = pnand %p4029_p9, %p4026_p8 }
  0x1c   :  { %4034 = shalt.err (!%p4031_p10)
}
  0x1d   :  { %s4035_s28 = scalar_lea.vmem %s4179_s26, 256  ;;  %p4040_p12 = scmp.lt.s32.totalorder %s4179_s26, %s4179_s26 }
  0x1e   :  { %p4036_p11 = scmp.ne.s32.totalorder %s4179_s26, %s4035_s28  ;;  %p4041_p13 = scmp.lt.s32.totalorder %s4035_s28, %s4035_s28 }
  0x20   :  { %p4042_p0 = por %p4041_p13, %p4040_p12 }
  0x22   :  { %p4043_p1 = pnand %p4042_p0, %p4036_p11 }
  0x24   :  { %4046 = shalt.err (!%p4043_p1)
}
  0x25   :  { %s4099_s3 = smov 128   ;;  %s4100_s24 = smov 8  }
  0x26   :  { %35 = dma.hbm_to_vmem [thread:$0]  %s4841_s1, 256, %s4179_s26, [#allocation4], %s4099_s3, %s4099_s3, %s4100_s24  }
  0x27   :  { %s4101_s13 = smov [#allocation7]   ;;  %s4102_s14 = smov [#allocation8]  }
  0x28   :  { %s57_s11 = sshll.u32 %s4101_s13, 4  ;;  %s71_s15 = sshll.u32 %s4102_s14, 4  ;;  %s58_s11 = int_to_ptr.vmem [resolvable:$true] %s57_s11  ;;  %s4210_s15 = int_to_ptr.vmem [resolvable:$true] %s71_s15 }
  0x29   :  { %s4047_s18 = scalar_lea.hbm %s4846_s6, 1024 }
  0x2a   :  { %p4048_p2 = scmp.ne.s32.totalorder %s4846_s6, %s4047_s18  ;;  %p4051_p3 = scmp.lt.u32.totalorder %s4047_s18, %s4846_s6 }
  0x2c   :  { %p4053_p4 = pnand %p4051_p3, %p4048_p2 }
  0x2e   :  { %4056 = shalt.err (!%p4053_p4)
}
  0x2f   :  { %s4057_s1 = scalar_lea.vmem %s58_s11, 1024  ;;  %p4062_p6 = scmp.lt.s32.totalorder %s58_s11, %s58_s11 }
  0x30   :  { %p4058_p5 = scmp.ne.s32.totalorder %s58_s11, %s4057_s1  ;;  %p4063_p7 = scmp.lt.s32.totalorder %s4057_s1, %s4057_s1 }
  0x32   :  { %p4064_p8 = por %p4063_p7, %p4062_p6 }
  0x34   :  { %p4065_p9 = pnand %p4064_p8, %p4058_p5 }
  0x36   :  { %4068 = shalt.err (!%p4065_p9)
}
  0x37   :  { %63 = dma.hbm_to_vmem [thread:$0]  %s4846_s6, 1024, %s58_s11, [#allocation6], %s4099_s3, %s4099_s3, %s4100_s24  }
  0x38   :  { %s4069_s28 = scalar_lea.hbm %s4848_s8, 1024 }
  0x39   :  { %p4070_p10 = scmp.ne.s32.totalorder %s4848_s8, %s4069_s28  ;;  %p4073_p11 = scmp.lt.u32.totalorder %s4069_s28, %s4848_s8 }
  0x3b   :  { %p4075_p12 = pnand %p4073_p11, %p4070_p10 }
  0x3d   :  { %4078 = shalt.err (!%p4075_p12)
}
  0x3e   :  { %s4079_s16 = scalar_lea.vmem %s4210_s15, 1024  ;;  %p4084_p0 = scmp.lt.s32.totalorder %s4210_s15, %s4210_s15 }
  0x3f   :  { %p4080_p13 = scmp.ne.s32.totalorder %s4210_s15, %s4079_s16  ;;  %p4085_p1 = scmp.lt.s32.totalorder %s4079_s16, %s4079_s16 }
  0x41   :  { %p4086_p2 = por %p4085_p1, %p4084_p0 }
  0x43   :  { %p4087_p3 = pnand %p4086_p2, %p4080_p13 }
  0x45   :  { %4090 = shalt.err (!%p4087_p3)
}
  0x46   :  { %s4103_s6 = smov 256   ;;  %s4104_s3 = smov 16  }
  0x47   :  { %77 = dma.hbm_to_vmem [thread:$0]  %s4848_s8, 1024, %s4210_s15, [#allocation9], %s4103_s6, %s4103_s6, %s4104_s3  }
  0x48   :  { %4091 = dma.done.wait [#allocation4], 256  }
  0x49   :  { %4092 = vsyncadd [#allocation4], 4294967040 }
  0x4a   :  { %4093 = dma.done.wait [#allocation6], 1040  }
  0x4b   :  { %4094 = vsyncadd [#allocation6], 4294966256 }
  0x4c   :  { %4095 = dma.done.wait [#allocation9], 1024  }
  0x4d   :  { %4096 = vsyncadd [#allocation9], 4294966272  ;;  %v4105_v1 = vmov 0.0|0.0   ;;  %vm4106_vm0 = vmmov 0   ;;  %v4107_v2 = vmov 0.0   ;;  %vm113_vm1 = vcmask 130048  }
  0x4e   :  { %3542 = vmatprep.subr.bf16.mxu1 %v4105_v1  ;;  %3154 = vmatprep.mubr.msk.f32.mxu1 %vm4106_vm0, %v4107_v2  ;;  %v104_v3 = vld [vmem:[#allocation3] sm:$0xff]  ;;  %v105_v4 = vld [vmem:[#allocation3 + $0x8] sm:$0xff]  ;;  %v246_v11 = vld [vmem:[%s4842_s2 + $0x18] sm:$0xff]  ;;  %vm277_vm2 = vcmask 261120   ;;  %vm381_vm3 = vcmask 523264   ;;  %s4110_s16 = smov 96  }
  0x4f   :  { %v243_v5 = vld [vmem:[%s4842_s2] sm:$0xff]  ;;  %v3538_v6 = vpack.c.bf16 %v105_v4, %v104_v3  ;;  %v244_v7 = vld [vmem:[%s4842_s2 + $0x8] sm:$0xff]  ;;  %v245_v10 = vld [vmem:[%s4842_s2 + $0x10] sm:$0xff]  ;;  %s4108_s2 = smov 32   ;;  %vm2866_vm4 = vcmask 7168  }
  0x50   :  { %v96_v8 = vld [vmem:[%s4840_s0] sm:$0xff]  ;;  %v4253_v9 = vpack.c.bf16 %v244_v7, %v243_v5  ;;  %v97_v12 = vld [vmem:[%s4840_s0 + $0x8] sm:$0xff]  ;;  %v4266_v13 = vpack.c.bf16 %v246_v11, %v245_v10  ;;  %v4276_v14 = vld [vmem:[#allocation5] ss:$0 sm:$0xff] }
  0x51   :  { %3134 = vmatprep.mubr.msk.f32.mxu0 %vm113_vm1, %v96_v8  ;;  %3539 = vmatprep.subr.bf16.mxu0 %v3538_v6  ;;  %v247_v31 = vld [vmem:[%s4844_s4] sm:$0xff]  ;;  %v248_v32 = vld [vmem:[%s4844_s4 + $0x8] sm:$0xff]  ;;  %v98_v33 = vld [vmem:[%s4840_s0 + $0x10] sm:$0xff] }
  0x52   :  { %3544 = vmatpush3.bf16.msra.mxu1 %v4253_v9  ;;  %3541 = vmatpush3.bf16.msra.mxu0 %v3538_v6  ;;  %v4295_v34 = vpack.c.bf16 %v248_v32, %v247_v31  ;;  %v99_v35 = vld [vmem:[%s4840_s0 + $0x18] sm:$0xff]  ;;  %v249_v36 = vld [vmem:[%s4844_s4 + $0x10] sm:$0xff]  ;;  %v100_v38 = vld [vmem:[%s4840_s0 + $0x20] sm:$0xff] }
  0x53   :  { %3545 = vmatprep.subr.bf16.mxu1 %v4105_v1  ;;  %3548 = vmatprep.subr.bf16.mxu0 %v4105_v1  ;;  %v250_v37 = vld [vmem:[%s4844_s4 + $0x18] sm:$0xff]  ;;  %v101_v40 = vld [vmem:[%s4840_s0 + $0x28] sm:$0xff]  ;;  %v251_v41 = vld [vmem:[%s4844_s4 + $0x20] sm:$0xff] }
  0x54   :  { %v4312_v39 = vpack.c.bf16 %v250_v37, %v249_v36  ;;  %v252_v42 = vld [vmem:[%s4844_s4 + $0x28] sm:$0xff]  ;;  %v102_v43 = vld [vmem:[%s4840_s0 + $0x30] sm:$0xff]  ;;  %v103_v45 = vld [vmem:[%s4840_s0 + $0x38] sm:$0xff]  ;;  %s4109_s0 = smov 64  }
  0x55   :  { %3135 = vmatmul.mubr.msk.f32.vlgmr.msra.gmra.mrb[0].mxu0 %vm113_vm1, %v97_v12  ;;  %v4330_v44 = vpack.c.bf16 %v252_v42, %v251_v41  ;;  %v253_v46 = vld [vmem:[%s4844_s4 + $0x30] sm:$0xff]  ;;  %v254_v47 = vld [vmem:[%s4844_s4 + $0x38] sm:$0xff]  ;;  %v4380_v60 = vld [vmem:[%s4845_s5] ss:$0 sm:$0xff] }
  0x56   :  { %3547 = vmatpush3.bf16.msra.mxu1 %v4266_v13  ;;  %3137 = vmatprep.mubr.msk.f32.mxu0 %vm113_vm1, %v98_v33  ;;  %v4346_v49 = vpack.c.bf16 %v254_v47, %v253_v46  ;;  %v256_v31 = vld [vmem:[#allocation7 + $0x8] sm:$0xff]  ;;  %v257_v32 = vld [vmem:[#allocation7 + $0x10] sm:$0xff]  ;;  %v262_v42 = vld [vmem:[#allocation7 + $0x38] sm:$0xff] }
  0x57   :  { %3560 = vmatprep.subr.bf16.mxu1 %v4105_v1  ;;  %3550 = vmatpush3.bf16.msra.mxu0 %v4295_v34  ;;  %v261_v41 = vld [vmem:[#allocation7 + $0x30] sm:$0xff] }
  0x58   :  { %3551 = vmatprep.subr.bf16.mxu0 %v4105_v1 }
  0x59   :  { %3155 = vmatmul.mubr.f32.vlgmr.msra.gmra.mrb[0].mxu1 %v4107_v2  ;;  %3138 = vmatmul.mubr.msk.f32.gmra.mrb[2].mxu0 %vm113_vm1, %v99_v35  ;;  %v258_v35 = vld [vmem:[#allocation7 + $0x18] sm:$0xff] }
  0x5a   :  { %3192 = vmatprep.mubr.msk.f32.mxu1 %vm4106_vm0, %v4107_v2  ;;  %3140 = vmatprep.mubr.msk.f32.mxu0 %vm113_vm1, %v100_v38  ;;  %v4400_v37 = vpack.c.bf16 %v258_v35, %v257_v32  ;;  %v260_v38 = vld [vmem:[#allocation7 + $0x28] sm:$0xff] }
  0x5b   :  { %3553 = vmatpush3.bf16.msra.mxu0 %v4312_v39 }
  0x5c   :  { %3554 = vmatprep.subr.bf16.mxu0 %v4105_v1 }
  0x5d   :  { %3141 = vmatmul.mubr.msk.f32.gmra.mrb[4].mxu0 %vm113_vm1, %v101_v40 }
  0x5e   :  { %3143 = vmatprep.mubr.msk.f32.mxu0 %vm113_vm1, %v102_v43 }
  0x5f   :  { %3556 = vmatpush3.bf16.msra.mxu0 %v4330_v44 }
  0x60   :  { %3557 = vmatprep.subr.bf16.mxu0 %v4105_v1 }
  0x61   :  { %3144 = vmatmul.mubr.msk.f32.gmra.mrb[6].mxu0 %vm113_vm1, %v103_v45  ;;  %v4413_v45 = vpack.c.bf16 %v262_v42, %v261_v41 }
  0x62   :  { %3173 = vmatprep.mubr.msk.f32.mxu0 %vm4106_vm0, %v4107_v2 }
  0x63   :  { %3559 = vmatpush3.bf16.msra.mxu0 %v4346_v49 }
  0x64   :  { %3572 = vmatprep.subr.bf16.mxu0 %v4105_v1 }
 0x128   :  { %v4278_v15 = vpop.f32.mrb[0].mxu0 }
 0x129   :  { %v204_v16 = vpop.f32.mrb[1].mxu0  ;;  %v210_v0 = vadd.f32 %v4278_v15, %v4276_v14 }
 0x12a   :  { %v205_v17 = vadd.f32 %v4276_v14, %v204_v16 }
 0x12c   :  { %v347_v18 = vpop.f32.mrb[0].mxu1  ;;  %v4354_v52 = vpop.f32.mrb[2].mxu0 }
 0x12d   :  { %v351_v19 = vadd.f32 %v347_v18, %v205_v17  ;;  %v3156_v20 = vpop.f32.mrb[1].mxu1  ;;  %v4356_v53 = vpop.f32.mrb[3].mxu0 }
 0x12f   :  { %3804 = vtanh.f32 %v351_v19  ;;  %v2886_v22 = vmul.f32 -1.442695, %v351_v19 }
 0x130   :  { %v4358_v54 = vpop.f32.mrb[4].mxu0 }
 0x131   :  { %3806 = vpow2.f32 %v2886_v22  ;;  %v4360_v55 = vpop.f32.mrb[5].mxu0 }
 0x134   :  { %v4362_v56 = vpop.f32.mrb[6].mxu0 }
 0x135   :  { %v4364_v57 = vpop.f32.mrb[7].mxu0 }
 0x139   :  { %v3805_v21 = vpop.eup %3804 }
 0x13a   :  { %361 = vrot.lane.b32.xlu0 %v3805_v21, %s4108_s2 }
 0x13b   :  { %v3807_v23 = vpop.eup %3806 }
 0x13c   :  { %v355_v24 = vadd.f32 1.0, %v3807_v23 }
 0x13e   :  { %3808 = vrcp.f32 %v355_v24 }
 0x148   :  { %v3809_v25 = vpop.eup %3808 }
 0x149   :  { %v359_v28 = vmul.f32 0.0, %v3809_v25 }
 0x1ac   :  { %v362_v26 = vpop.permute.xlu0 %361 }
 0x1ad   :  { %v364_v27 = vmul.f32 %v3809_v25, %v362_v26 }
 0x1af   :  { %366 = vrot.lane.b32.xlu0 %v364_v27, %s4108_s2 }
 0x221   :  { %v367_v29 = vpop.permute.xlu0 %366 }
 0x222   :  { %v4283_v30 = vadd.f32 %v367_v29, %v359_v28  ;;  %v255_v29 = vld [vmem:[#allocation7] sm:$0xff] }
 0x223   :  { %v4396_v33 = vpack.c.bf16 %v256_v31, %v255_v29 }
 0x224   :  { %3810 = vtanh.f32 %v4283_v30 }
 0x225   :  { %3562 = vmatpush3.bf16.msra.mxu1 %v4396_v33 }
 0x226   :  { %3563 = vmatprep.subr.bf16.mxu1 %v4105_v1 }
 0x229   :  { %3565 = vmatpush3.bf16.msra.mxu1 %v4400_v37 }
 0x22a   :  { %3566 = vmatprep.subr.bf16.mxu1 %v4105_v1 }
 0x22e   :  { %v3811_v48 = vpop.eup %3810 }
 0x22f   :  { %372 = vrot.lane.b32.xlu1 %v3811_v48, %s4108_s2 }
 0x2a1   :  { %v373_v50 = vpop.permute.xlu1 %372 }
 0x2a2   :  { %v375_v51 = vmul.f32 %v3809_v25, %v373_v50 }
 0x2a4   :  { %377 = vrot.lane.b32.xlu1 %v375_v51, %s4109_s0 }
 0x316   :  { %v378_v58 = vpop.permute.xlu1 %377 }
 0x317   :  { %v380_v59 = vsel %vm277_vm2, %v378_v58, 0.0 }
 0x318   :  { %3174 = vmatmul.mubr.msk.f32.vlgmr.msra.gmra.mrb[8].mxu0 %vm381_vm3, %v380_v59 }
 0x319   :  { %3574 = vmatpush3.bf16.msra.mxu0 %v4253_v9  ;;  %3203 = vmatprep.mubr.msk.f32.mxu0 %vm4106_vm0, %v4107_v2 }
 0x31a   :  { %3575 = vmatprep.subr.bf16.mxu0 %v4105_v1 }
 0x31d   :  { %3577 = vmatpush3.bf16.msra.mxu0 %v4266_v13 }
 0x31e   :  { %3590 = vmatprep.subr.bf16.mxu0 %v4105_v1 }
 0x320   :  { %3204 = vmatmul.mubr.msk.f32.vlgmr.msra.gmra.mrb[10].mxu0 %vm277_vm2, %v378_v58 }
 0x321   :  { %3241 = vmatprep.mubr.msk.f32.mxu0 %vm4106_vm0, %v4107_v2  ;;  %3592 = vmatpush3.bf16.msra.mxu0 %v4396_v33 }
 0x322   :  { %3593 = vmatprep.subr.bf16.mxu0 %v4105_v1 }
 0x325   :  { %3595 = vmatpush3.bf16.msra.mxu0 %v4400_v37 }
 0x326   :  { %3596 = vmatprep.subr.bf16.mxu0 %v4105_v1 }
 0x3eb   :  { %v451_v61 = vpop.f32.mrb[8].mxu0 }
 0x3ec   :  { %v452_v62 = vadd.f32 %v4380_v60, %v451_v61  ;;  %v3175_v63 = vpop.f32.mrb[9].mxu0 }
 0x3ed   :  { %v4459_v63 = vld [vmem:[%s4847_s7] ss:$0 sm:$0xff] }
 0x3ee   :  { %3812 = vtanh.f32 %v452_v62  ;;  %v2888_v8 = vmul.f32 -1.442695, %v452_v62 }
 0x3f3   :  { %v649_v3 = vpop.f32.mrb[10].mxu0 }
 0x3f4   :  { %v653_v4 = vadd.f32 %v649_v3, %v210_v0  ;;  %v3205_v5 = vpop.f32.mrb[11].mxu0 }
 0x3f6   :  { %3814 = vtanh.f32 %v653_v4  ;;  %v2892_v10 = vmul.f32 -1.442695, %v653_v4 }
 0x3f7   :  { %3816 = vpow2.f32 %v2888_v8 }
 0x3f8   :  { %v3813_v6 = vpop.eup %3812  ;;  %3818 = vpow2.f32 %v2892_v10  ;;  %v215_v10 = vadd.f32 %v4276_v14, %v4356_v53 }
 0x3f9   :  { %464 = vrot.lane.b32.xlu0 %v3813_v6, %s4108_s2 }
 0x400   :  { %v3815_v7 = vpop.eup %3814 }
 0x401   :  { %663 = vrot.lane.b32.xlu1 %v3815_v7, %s4108_s2  ;;  %v3817_v11 = vpop.eup %3816 }
 0x402   :  { %v458_v12 = vadd.f32 1.0, %v3817_v11  ;;  %v3819_v16 = vpop.eup %3818 }
 0x403   :  { %v657_v17 = vadd.f32 1.0, %v3819_v16 }
 0x404   :  { %3820 = vrcp.f32 %v458_v12 }
 0x405   :  { %3822 = vrcp.f32 %v657_v17 }
 0x40e   :  { %v3821_v15 = vpop.eup %3820 }
 0x40f   :  { %v3823_v20 = vpop.eup %3822  ;;  %v462_v23 = vmul.f32 0.0, %v3821_v15 }
 0x410   :  { %v661_v26 = vmul.f32 %v3823_v20, %v4283_v30  ;;  %v259_v30 = vld [vmem:[#allocation7 + $0x20] sm:$0xff] }
 0x411   :  { %v4406_v40 = vpack.c.bf16 %v260_v38, %v259_v30 }
 0x413   :  { %3568 = vmatpush3.bf16.msra.mxu1 %v4406_v40  ;;  %3598 = vmatpush3.bf16.msra.mxu0 %v4406_v40 }
 0x414   :  { %3569 = vmatprep.subr.bf16.mxu1 %v4105_v1  ;;  %3599 = vmatprep.subr.bf16.mxu0 %v4105_v1 }
 0x417   :  { %3571 = vmatpush3.bf16.msra.mxu1 %v4413_v45  ;;  %3601 = vmatpush3.bf16.msra.mxu0 %v4413_v45 }
 0x418   :  { %3578 = vmatprep.subr.bf16.mxu1 %v4105_v1  ;;  %3608 = vmatprep.subr.bf16.mxu0 %v4105_v1 }
 0x46b   :  { %v465_v18 = vpop.permute.xlu0 %464 }
 0x46c   :  { %v467_v19 = vmul.f32 %v3821_v15, %v465_v18 }
 0x46e   :  { %469 = vrot.lane.b32.xlu0 %v467_v19, %s4108_s2 }
 0x473   :  { %v664_v21 = vpop.permute.xlu1 %663 }
 0x474   :  { %v666_v22 = vmul.f32 %v3823_v20, %v664_v21 }
 0x476   :  { %668 = vrot.lane.b32.xlu1 %v666_v22, %s4108_s2 }
 0x4e0   :  { %v470_v24 = vpop.permute.xlu0 %469 }
 0x4e1   :  { %v4389_v25 = vadd.f32 %v470_v24, %v462_v23 }
 0x4e3   :  { %3824 = vtanh.f32 %v4389_v25 }
 0x4e8   :  { %v669_v27 = vpop.permute.xlu1 %668 }
 0x4e9   :  { %v4393_v28 = vadd.f32 %v669_v27, %v661_v26 }
 0x4eb   :  { %3826 = vtanh.f32 %v4393_v28 }
 0x4ed   :  { %v3825_v36 = vpop.eup %3824 }
 0x4ee   :  { %475 = vrot.lane.b32.xlu0 %v3825_v36, %s4108_s2 }
 0x4f5   :  { %v3827_v43 = vpop.eup %3826 }
 0x4f6   :  { %674 = vrot.lane.b32.xlu1 %v3827_v43, %s4108_s2 }
 0x560   :  { %v476_v46 = vpop.permute.xlu0 %475 }
 0x561   :  { %v478_v47 = vmul.f32 %v3821_v15, %v476_v46 }
 0x563   :  { %480 = vrot.lane.b32.xlu0 %v478_v47, %s4109_s0 }
 0x567   :  { %682 = vrot.lane.b32.xlu0 %v478_v47, %s4110_s16 }
 0x568   :  { %v675_v48 = vpop.permute.xlu1 %674 }
 0x569   :  { %v677_v50 = vmul.f32 %v3823_v20, %v675_v48 }
 0x56b   :  { %679 = vrot.lane.b32.xlu1 %v677_v50, %s4109_s0 }
 0x5d5   :  { %v481_v51 = vpop.permute.xlu0 %480 }
 0x5d6   :  { %v483_v58 = vsel %vm277_vm2, %v481_v51, 0.0 }
 0x5d7   :  { %3193 = vmatmul.mubr.msk.f32.vlgmr.msra.gmra.mrb[2].mxu1 %vm381_vm3, %v483_v58 }
 0x5d8   :  { %3580 = vmatpush3.bf16.msra.mxu1 %v4295_v34  ;;  %3222 = vmatprep.mubr.msk.f32.mxu1 %vm4106_vm0, %v4107_v2 }
 0x5d9   :  { %3581 = vmatprep.subr.bf16.mxu1 %v4105_v1  ;;  %v683_v61 = vpop.permute.xlu0 %682 }
 0x5dc   :  { %3583 = vmatpush3.bf16.msra.mxu1 %v4312_v39 }
 0x5dd   :  { %3584 = vmatprep.subr.bf16.mxu1 %v4105_v1  ;;  %v680_v59 = vpop.permute.xlu1 %679 }
 0x5de   :  { %v685_v62 = vsel %vm277_vm2, %v680_v59, %v683_v61 }
 0x5e0   :  { %3586 = vmatpush3.bf16.msra.mxu1 %v4330_v44 }
 0x5e1   :  { %3587 = vmatprep.subr.bf16.mxu1 %v4105_v1 }
 0x5e4   :  { %3589 = vmatpush3.bf16.msra.mxu1 %v4346_v49 }
 0x5e5   :  { %3602 = vmatprep.subr.bf16.mxu1 %v4105_v1 }
 0x5e7   :  { %3223 = vmatmul.mubr.msk.f32.vlgmr.msra.gmra.mrb[4].mxu1 %vm381_vm3, %v685_v62 }
 0x5e8   :  { %3604 = vmatpush3.bf16.msra.mxu1 %v4253_v9  ;;  %3252 = vmatprep.mubr.msk.f32.mxu1 %vm4106_vm0, %v4107_v2 }
 0x5e9   :  { %3605 = vmatprep.subr.bf16.mxu1 %v4105_v1 }
 0x5ec   :  { %3607 = vmatpush3.bf16.msra.mxu1 %v4266_v13 }
 0x5ed   :  { %3620 = vmatprep.subr.bf16.mxu1 %v4105_v1 }
 0x5ef   :  { %3253 = vmatmul.mubr.msk.f32.vlgmr.msra.gmra.mrb[6].mxu1 %vm277_vm2, %v680_v59 }
 0x5f0   :  { %3622 = vmatpush3.bf16.msra.mxu1 %v4396_v33  ;;  %3290 = vmatprep.mubr.msk.f32.mxu1 %vm4106_vm0, %v4107_v2 }
 0x5f1   :  { %3623 = vmatprep.subr.bf16.mxu1 %v4105_v1 }
 0x5f4   :  { %3625 = vmatpush3.bf16.msra.mxu1 %v4400_v37 }
 0x5f5   :  { %3626 = vmatprep.subr.bf16.mxu1 %v4105_v1 }
 0x5f8   :  { %3628 = vmatpush3.bf16.msra.mxu1 %v4406_v40 }
 0x5f9   :  { %3629 = vmatprep.subr.bf16.mxu1 %v4105_v1 }
 0x5fc   :  { %3631 = vmatpush3.bf16.msra.mxu1 %v4413_v45 }
 0x5fd   :  { %3638 = vmatprep.subr.bf16.mxu1 %v4105_v1 }
 0x6aa   :  { %v553_v0 = vpop.f32.mrb[2].mxu1 }
 0x6ab   :  { %v554_v3 = vadd.f32 %v4459_v63, %v553_v0  ;;  %v3194_v4 = vpop.f32.mrb[3].mxu1 }
 0x6ad   :  { %3828 = vtanh.f32 %v554_v3  ;;  %v2890_v18 = vmul.f32 -1.442695, %v554_v3 }
 0x6b7   :  { %v3829_v5 = vpop.eup %3828 }
 0x6b8   :  { %566 = vrot.lane.b32.xlu1 %v3829_v5, %s4108_s2 }
 0x6ba   :  { %v755_v6 = vpop.f32.mrb[4].mxu1 }
 0x6bb   :  { %v756_v7 = vadd.f32 %v4380_v60, %v755_v6  ;;  %v3224_v8 = vpop.f32.mrb[5].mxu1 }
 0x6bd   :  { %3830 = vtanh.f32 %v756_v7  ;;  %v2894_v20 = vmul.f32 -1.442695, %v756_v7 }
 0x6c2   :  { %v957_v11 = vpop.f32.mrb[6].mxu1 }
 0x6c3   :  { %v961_v12 = vadd.f32 %v957_v11, %v215_v10  ;;  %v3254_v16 = vpop.f32.mrb[7].mxu1 }
 0x6c5   :  { %3832 = vtanh.f32 %v961_v12  ;;  %v2898_v22 = vmul.f32 -1.442695, %v961_v12 }
 0x6c6   :  { %3834 = vpow2.f32 %v2890_v18 }
 0x6c7   :  { %v3831_v17 = vpop.eup %3830  ;;  %3836 = vpow2.f32 %v2894_v20 }
 0x6c8   :  { %768 = vrot.lane.b32.xlu0 %v3831_v17, %s4108_s2 }
 0x6cf   :  { %v3833_v15 = vpop.eup %3832 }
 0x6d0   :  { %971 = vrot.lane.b32.xlu1 %v3833_v15, %s4108_s2  ;;  %v3835_v19 = vpop.eup %3834 }
 0x6d1   :  { %v560_v21 = vadd.f32 1.0, %v3835_v19  ;;  %v3837_v53 = vpop.eup %3836 }
 0x6d2   :  { %v762_v27 = vadd.f32 1.0, %v3837_v53  ;;  %v220_v53 = vadd.f32 %v4354_v52, %v4276_v14 }
 0x6d3   :  { %3838 = vrcp.f32 %v560_v21 }
 0x6d4   :  { %3840 = vpow2.f32 %v2898_v22 }
 0x6d5   :  { %3842 = vrcp.f32 %v762_v27 }
 0x6dd   :  { %v3839_v23 = vpop.eup %3838 }
 0x6de   :  { %v3841_v29 = vpop.eup %3840  ;;  %v564_v42 = vmul.f32 0.0, %v3839_v23 }
 0x6df   :  { %v965_v31 = vadd.f32 1.0, %v3841_v29  ;;  %v3843_v32 = vpop.eup %3842 }
 0x6e0   :  { %v766_v48 = vmul.f32 %v3843_v32, %v4389_v25 }
 0x6e1   :  { %3844 = vrcp.f32 %v965_v31 }
 0x6eb   :  { %v3845_v30 = vpop.eup %3844 }
 0x6ec   :  { %v969_v58 = vmul.f32 %v3845_v30, %v4393_v28 }
 0x72a   :  { %v567_v24 = vpop.permute.xlu1 %566 }
 0x72b   :  { %v569_v26 = vmul.f32 %v3839_v23, %v567_v24 }
 0x72d   :  { %571 = vrot.lane.b32.xlu0 %v569_v26, %s4108_s2 }
 0x73a   :  { %v769_v35 = vpop.permute.xlu0 %768 }
 0x73b   :  { %v771_v36 = vmul.f32 %v3843_v32, %v769_v35 }
 0x73d   :  { %773 = vrot.lane.b32.xlu1 %v771_v36, %s4108_s2 }
 0x742   :  { %v972_v38 = vpop.permute.xlu1 %971 }
 0x743   :  { %v974_v41 = vmul.f32 %v3845_v30, %v972_v38 }
 0x745   :  { %976 = vrot.lane.b32.xlu0 %v974_v41, %s4108_s2 }
 0x79f   :  { %v572_v43 = vpop.permute.xlu0 %571 }
 0x7a0   :  { %v4471_v46 = vadd.f32 %v572_v43, %v564_v42 }
 0x7a2   :  { %3846 = vtanh.f32 %v4471_v46 }
 0x7ac   :  { %v3847_v47 = vpop.eup %3846 }
 0x7ad   :  { %577 = vrot.lane.b32.xlu1 %v3847_v47, %s4108_s2 }
 0x7af   :  { %v774_v50 = vpop.permute.xlu1 %773 }
 0x7b0   :  { %v4476_v51 = vadd.f32 %v774_v50, %v766_v48 }
 0x7b2   :  { %3848 = vtanh.f32 %v4476_v51 }
 0x7b7   :  { %v977_v59 = vpop.permute.xlu0 %976 }
 0x7b8   :  { %v4480_v61 = vadd.f32 %v977_v59, %v969_v58 }
 0x7ba   :  { %3850 = vtanh.f32 %v4480_v61 }
 0x7bc   :  { %v3849_v62 = vpop.eup %3848 }
 0x7bd   :  { %779 = vrot.lane.b32.xlu0 %v3849_v62, %s4108_s2 }
 0x7c4   :  { %v3851_v0 = vpop.eup %3850 }
 0x7c5   :  { %982 = vrot.lane.b32.xlu1 %v3851_v0, %s4108_s2 }
 0x81f   :  { %v578_v3 = vpop.permute.xlu1 %577 }
 0x820   :  { %v580_v25 = vmul.f32 %v3839_v23, %v578_v3 }
 0x822   :  { %788 = vrot.lane.b32.xlu1 %v580_v25, %s4110_s16 }
 0x82f   :  { %v780_v4 = vpop.permute.xlu0 %779 }
 0x830   :  { %v782_v5 = vmul.f32 %v3843_v32, %v780_v4 }
 0x832   :  { %784 = vrot.lane.b32.xlu0 %v782_v5, %s4109_s0  ;;  %990 = vrot.lane.b32.xlu1 %v782_v5, %s4110_s16 }
 0x837   :  { %v983_v28 = vpop.permute.xlu1 %982 }
 0x838   :  { %v985_v6 = vmul.f32 %v3845_v30, %v983_v28 }
 0x83a   :  { %987 = vrot.lane.b32.xlu0 %v985_v6, %s4109_s0 }
 0x894   :  { %v789_v7 = vpop.permute.xlu1 %788 }
 0x8a4   :  { %v785_v8 = vpop.permute.xlu0 %784  ;;  %v991_v12 = vpop.permute.xlu1 %990 }
 0x8a5   :  { %v791_v10 = vsel %vm277_vm2, %v785_v8, %v789_v7 }
 0x8a6   :  { %3242 = vmatmul.mubr.msk.f32.vlgmr.msra.gmra.mrb[12].mxu0 %vm381_vm3, %v791_v10 }
 0x8a7   :  { %3610 = vmatpush3.bf16.msra.mxu0 %v4295_v34  ;;  %3271 = vmatprep.mubr.msk.f32.mxu0 %vm4106_vm0, %v4107_v2 }
 0x8a8   :  { %3611 = vmatprep.subr.bf16.mxu0 %v4105_v1 }
 0x8ab   :  { %3613 = vmatpush3.bf16.msra.mxu0 %v4312_v39 }
 0x8ac   :  { %3614 = vmatprep.subr.bf16.mxu0 %v4105_v1  ;;  %v988_v11 = vpop.permute.xlu0 %987 }
 0x8ad   :  { %v993_v16 = vsel %vm277_vm2, %v988_v11, %v991_v12 }
 0x8af   :  { %3616 = vmatpush3.bf16.msra.mxu0 %v4330_v44 }
 0x8b0   :  { %3617 = vmatprep.subr.bf16.mxu0 %v4105_v1 }
 0x8b3   :  { %3619 = vmatpush3.bf16.msra.mxu0 %v4346_v49 }
 0x8b4   :  { %3632 = vmatprep.subr.bf16.mxu0 %v4105_v1 }
 0x8b6   :  { %3272 = vmatmul.mubr.msk.f32.vlgmr.msra.gmra.mrb[14].mxu0 %vm381_vm3, %v993_v16 }
 0x8b7   :  { %3634 = vmatpush3.bf16.msra.mxu0 %v4253_v9  ;;  %3301 = vmatprep.mubr.msk.f32.mxu0 %vm4106_vm0, %v4107_v2 }
 0x8b8   :  { %3635 = vmatprep.subr.bf16.mxu0 %v4105_v1 }
 0x8bb   :  { %3637 = vmatpush3.bf16.msra.mxu0 %v4266_v13 }
 0x8bc   :  { %3650 = vmatprep.subr.bf16.mxu0 %v4105_v1 }
 0x8be   :  { %3302 = vmatmul.mubr.msk.f32.vlgmr.msra.gmra.mrb[16].mxu0 %vm277_vm2, %v988_v11 }
 0x8bf   :  { %3652 = vmatpush3.bf16.msra.mxu0 %v4396_v33  ;;  %3339 = vmatprep.mubr.msk.f32.mxu0 %vm4106_vm0, %v4107_v2 }
 0x8c0   :  { %3653 = vmatprep.subr.bf16.mxu0 %v4105_v1 }
 0x8c3   :  { %3655 = vmatpush3.bf16.msra.mxu0 %v4400_v37 }
 0x8c4   :  { %3656 = vmatprep.subr.bf16.mxu0 %v4105_v1 }
 0x8c7   :  { %3658 = vmatpush3.bf16.msra.mxu0 %v4406_v40 }
 0x8c8   :  { %3659 = vmatprep.subr.bf16.mxu0 %v4105_v1 }
 0x8cb   :  { %3661 = vmatpush3.bf16.msra.mxu0 %v4413_v45 }
 0x8cc   :  { %3668 = vmatprep.subr.bf16.mxu0 %v4105_v1 }
 0x979   :  { %v861_v17 = vpop.f32.mrb[12].mxu0 }
 0x97a   :  { %v862_v15 = vadd.f32 %v4459_v63, %v861_v17  ;;  %v3243_v18 = vpop.f32.mrb[13].mxu0 }
 0x97c   :  { %3852 = vtanh.f32 %v862_v15  ;;  %v2896_v31 = vmul.f32 -1.442695, %v862_v15 }
 0x986   :  { %v3853_v19 = vpop.eup %3852 }
 0x987   :  { %874 = vrot.lane.b32.xlu0 %v3853_v19, %s4108_s2 }
 0x989   :  { %v1063_v20 = vpop.f32.mrb[14].mxu0 }
 0x98a   :  { %v1064_v21 = vadd.f32 %v4380_v60, %v1063_v20  ;;  %v3273_v22 = vpop.f32.mrb[15].mxu0 }
 0x98c   :  { %3854 = vtanh.f32 %v1064_v21  ;;  %v2900_v35 = vmul.f32 -1.442695, %v1064_v21 }
 0x991   :  { %v1265_v23 = vpop.f32.mrb[16].mxu0 }
 0x992   :  { %v1269_v24 = vadd.f32 %v1265_v23, %v220_v53  ;;  %v3303_v26 = vpop.f32.mrb[17].mxu0 }
 0x994   :  { %3856 = vtanh.f32 %v1269_v24  ;;  %v2904_v30 = vmul.f32 -1.442695, %v1269_v24 }
 0x995   :  { %3858 = vpow2.f32 %v2896_v31 }
 0x996   :  { %v3855_v27 = vpop.eup %3854  ;;  %3860 = vpow2.f32 %v2900_v35 }
 0x997   :  { %1076 = vrot.lane.b32.xlu1 %v3855_v27, %s4108_s2 }
 0x99e   :  { %v3857_v29 = vpop.eup %3856 }
 0x99f   :  { %1279 = vrot.lane.b32.xlu0 %v3857_v29, %s4108_s2  ;;  %v3859_v32 = vpop.eup %3858 }
 0x9a0   :  { %v868_v36 = vadd.f32 1.0, %v3859_v32  ;;  %v3861_v52 = vpop.eup %3860 }
 0x9a1   :  { %v1070_v43 = vadd.f32 1.0, %v3861_v52 }
 0x9a2   :  { %3862 = vrcp.f32 %v868_v36 }
 0x9a3   :  { %3864 = vpow2.f32 %v2904_v30  ;;  %v225_v30 = vadd.f32 %v4276_v14, %v4360_v55 }
 0x9a4   :  { %3866 = vrcp.f32 %v1070_v43 }
 0x9ac   :  { %v3863_v38 = vpop.eup %3862 }
 0x9ad   :  { %v3865_v47 = vpop.eup %3864  ;;  %v872_v25 = vmul.f32 %v3863_v38, %v4471_v46 }
 0x9ae   :  { %v1273_v48 = vadd.f32 1.0, %v3865_v47  ;;  %v3867_v50 = vpop.eup %3866 }
 0x9af   :  { %v1074_v6 = vmul.f32 %v3867_v50, %v4476_v51 }
 0x9b0   :  { %3868 = vrcp.f32 %v1273_v48 }
 0x9ba   :  { %v3869_v62 = vpop.eup %3868 }
 0x9bb   :  { %v1277_v10 = vmul.f32 %v3869_v62, %v4480_v61 }
 0x9f9   :  { %v875_v41 = vpop.permute.xlu0 %874 }
 0x9fa   :  { %v877_v42 = vmul.f32 %v3863_v38, %v875_v41 }
 0x9fc   :  { %879 = vrot.lane.b32.xlu1 %v877_v42, %s4108_s2 }
 0xa09   :  { %v1077_v58 = vpop.permute.xlu1 %1076 }
 0xa0a   :  { %v1079_v59 = vmul.f32 %v3867_v50, %v1077_v58 }
 0xa0c   :  { %1081 = vrot.lane.b32.xlu0 %v1079_v59, %s4108_s2 }
 0xa11   :  { %v1280_v0 = vpop.permute.xlu0 %1279 }
 0xa12   :  { %v1282_v3 = vmul.f32 %v3869_v62, %v1280_v0 }
 0xa14   :  { %1284 = vrot.lane.b32.xlu1 %v1282_v3, %s4108_s2 }
 0xa6e   :  { %v880_v4 = vpop.permute.xlu1 %879 }
 0xa6f   :  { %v4531_v5 = vadd.f32 %v880_v4, %v872_v25 }
 0xa71   :  { %3870 = vtanh.f32 %v4531_v5 }
 0xa7b   :  { %v3871_v28 = vpop.eup %3870 }
 0xa7c   :  { %885 = vrot.lane.b32.xlu0 %v3871_v28, %s4108_s2 }
 0xa7e   :  { %v1082_v7 = vpop.permute.xlu0 %1081 }
 0xa7f   :  { %v4536_v8 = vadd.f32 %v1082_v7, %v1074_v6 }
 0xa81   :  { %3872 = vtanh.f32 %v4536_v8 }
 0xa86   :  { %v1285_v11 = vpop.permute.xlu1 %1284 }
 0xa87   :  { %v4540_v12 = vadd.f32 %v1285_v11, %v1277_v10 }
 0xa89   :  { %3874 = vtanh.f32 %v4540_v12 }
 0xa8b   :  { %v3873_v46 = vpop.eup %3872 }
 0xa8c   :  { %1087 = vrot.lane.b32.xlu1 %v3873_v46, %s4108_s2 }
 0xa93   :  { %v3875_v16 = vpop.eup %3874 }
 0xa94   :  { %1290 = vrot.lane.b32.xlu0 %v3875_v16, %s4108_s2 }
 0xaee   :  { %v886_v17 = vpop.permute.xlu0 %885 }
 0xaef   :  { %v888_v51 = vmul.f32 %v3863_v38, %v886_v17 }
 0xaf1   :  { %1096 = vrot.lane.b32.xlu0 %v888_v51, %s4110_s16 }
 0xafe   :  { %v1088_v15 = vpop.permute.xlu1 %1087 }
 0xaff   :  { %v1090_v18 = vmul.f32 %v3867_v50, %v1088_v15 }
 0xb01   :  { %1092 = vrot.lane.b32.xlu1 %v1090_v18, %s4109_s0  ;;  %1298 = vrot.lane.b32.xlu0 %v1090_v18, %s4110_s16 }
 0xb06   :  { %v1291_v61 = vpop.permute.xlu0 %1290 }
 0xb07   :  { %v1293_v19 = vmul.f32 %v3869_v62, %v1291_v61 }
 0xb09   :  { %1295 = vrot.lane.b32.xlu1 %v1293_v19, %s4109_s0 }
 0xb63   :  { %v1097_v20 = vpop.permute.xlu0 %1096 }
 0xb73   :  { %v1093_v21 = vpop.permute.xlu1 %1092  ;;  %v1299_v23 = vpop.permute.xlu0 %1298 }
 0xb74   :  { %v1099_v22 = vsel %vm277_vm2, %v1093_v21, %v1097_v20 }
 0xb75   :  { %3291 = vmatmul.mubr.msk.f32.vlgmr.msra.gmra.mrb[8].mxu1 %vm381_vm3, %v1099_v22 }
 0xb76   :  { %3640 = vmatpush3.bf16.msra.mxu1 %v4295_v34  ;;  %3320 = vmatprep.mubr.msk.f32.mxu1 %vm4106_vm0, %v4107_v2 }
 0xb77   :  { %3641 = vmatprep.subr.bf16.mxu1 %v4105_v1 }
 0xb7a   :  { %3643 = vmatpush3.bf16.msra.mxu1 %v4312_v39 }
 0xb7b   :  { %3644 = vmatprep.subr.bf16.mxu1 %v4105_v1  ;;  %v1296_v53 = vpop.permute.xlu1 %1295 }
 0xb7c   :  { %v1301_v24 = vsel %vm277_vm2, %v1296_v53, %v1299_v23 }
 0xb7e   :  { %3646 = vmatpush3.bf16.msra.mxu1 %v4330_v44 }
 0xb7f   :  { %3647 = vmatprep.subr.bf16.mxu1 %v4105_v1 }
 0xb82   :  { %3649 = vmatpush3.bf16.msra.mxu1 %v4346_v49 }
 0xb83   :  { %3662 = vmatprep.subr.bf16.mxu1 %v4105_v1 }
 0xb85   :  { %3321 = vmatmul.mubr.msk.f32.vlgmr.msra.gmra.mrb[10].mxu1 %vm381_vm3, %v1301_v24 }
 0xb86   :  { %3664 = vmatpush3.bf16.msra.mxu1 %v4253_v9  ;;  %3350 = vmatprep.mubr.msk.f32.mxu1 %vm4106_vm0, %v4107_v2 }
 0xb87   :  { %3665 = vmatprep.subr.bf16.mxu1 %v4105_v1 }
 0xb8a   :  { %3667 = vmatpush3.bf16.msra.mxu1 %v4266_v13 }
 0xb8b   :  { %3680 = vmatprep.subr.bf16.mxu1 %v4105_v1 }
 0xb8d   :  { %3351 = vmatmul.mubr.msk.f32.vlgmr.msra.gmra.mrb[12].mxu1 %vm277_vm2, %v1296_v53 }
 0xb8e   :  { %3682 = vmatpush3.bf16.msra.mxu1 %v4396_v33  ;;  %3388 = vmatprep.mubr.msk.f32.mxu1 %vm4106_vm0, %v4107_v2 }
 0xb8f   :  { %3683 = vmatprep.subr.bf16.mxu1 %v4105_v1 }
 0xb92   :  { %3685 = vmatpush3.bf16.msra.mxu1 %v4400_v37 }
 0xb93   :  { %3686 = vmatprep.subr.bf16.mxu1 %v4105_v1 }
 0xb96   :  { %3688 = vmatpush3.bf16.msra.mxu1 %v4406_v40 }
 0xb97   :  { %3689 = vmatprep.subr.bf16.mxu1 %v4105_v1 }
 0xb9a   :  { %3691 = vmatpush3.bf16.msra.mxu1 %v4413_v45 }
 0xb9b   :  { %3698 = vmatprep.subr.bf16.mxu1 %v4105_v1 }
 0xc48   :  { %v1169_v26 = vpop.f32.mrb[8].mxu1 }
 0xc49   :  { %v1170_v27 = vadd.f32 %v4459_v63, %v1169_v26  ;;  %v3292_v29 = vpop.f32.mrb[9].mxu1 }
 0xc4b   :  { %3876 = vtanh.f32 %v1170_v27  ;;  %v2902_v47 = vmul.f32 -1.442695, %v1170_v27 }
 0xc55   :  { %v3877_v31 = vpop.eup %3876 }
 0xc56   :  { %1182 = vrot.lane.b32.xlu1 %v3877_v31, %s4108_s2 }
 0xc58   :  { %v1371_v32 = vpop.f32.mrb[10].mxu1 }
 0xc59   :  { %v1372_v35 = vadd.f32 %v4380_v60, %v1371_v32  ;;  %v3322_v36 = vpop.f32.mrb[11].mxu1 }
 0xc5b   :  { %3878 = vtanh.f32 %v1372_v35  ;;  %v2906_v50 = vmul.f32 -1.442695, %v1372_v35 }
 0xc60   :  { %v1573_v52 = vpop.f32.mrb[12].mxu1 }
 0xc61   :  { %v1577_v38 = vadd.f32 %v1573_v52, %v225_v30  ;;  %v3352_v41 = vpop.f32.mrb[13].mxu1 }
 0xc63   :  { %3880 = vtanh.f32 %v1577_v38  ;;  %v2910_v59 = vmul.f32 -1.442695, %v1577_v38 }
 0xc64   :  { %3882 = vpow2.f32 %v2902_v47 }
 0xc65   :  { %v3879_v42 = vpop.eup %3878  ;;  %3884 = vpow2.f32 %v2906_v50  ;;  %v4643_v50 = vld [vmem:[#allocation5] ss:$0 sm:$0xff] }
 0xc66   :  { %1384 = vrot.lane.b32.xlu0 %v3879_v42, %s4108_s2 }
 0xc6d   :  { %v3881_v43 = vpop.eup %3880 }
 0xc6e   :  { %1587 = vrot.lane.b32.xlu1 %v3881_v43, %s4108_s2  ;;  %v3883_v48 = vpop.eup %3882 }
 0xc6f   :  { %v1176_v58 = vadd.f32 1.0, %v3883_v48  ;;  %v3885_v14 = vpop.eup %3884 }
 0xc70   :  { %v1378_v3 = vadd.f32 1.0, %v3885_v14 }
 0xc71   :  { %3886 = vrcp.f32 %v1176_v58  ;;  %v230_v58 = vadd.f32 %v4643_v50, %v4358_v54 }
 0xc72   :  { %3888 = vpow2.f32 %v2910_v59 }
 0xc73   :  { %3890 = vrcp.f32 %v1378_v3 }
 0xc7b   :  { %v3887_v55 = vpop.eup %3886 }
 0xc7c   :  { %v3889_v25 = vpop.eup %3888  ;;  %v1180_v16 = vmul.f32 %v3887_v55, %v4531_v5 }
 0xc7d   :  { %v1581_v4 = vadd.f32 1.0, %v3889_v25  ;;  %v3891_v28 = vpop.eup %3890 }
 0xc7e   :  { %v1382_v18 = vmul.f32 %v3891_v28, %v4536_v8 }
 0xc7f   :  { %3892 = vrcp.f32 %v1581_v4 }
 0xc89   :  { %v3893_v10 = vpop.eup %3892 }
 0xc8a   :  { %v1585_v20 = vmul.f32 %v3893_v10, %v4540_v12 }
 0xcc8   :  { %v1183_v62 = vpop.permute.xlu1 %1182 }
 0xcc9   :  { %v1185_v0 = vmul.f32 %v3887_v55, %v1183_v62 }
 0xccb   :  { %1187 = vrot.lane.b32.xlu0 %v1185_v0, %s4108_s2 }
 0xcd8   :  { %v1385_v6 = vpop.permute.xlu0 %1384 }
 0xcd9   :  { %v1387_v7 = vmul.f32 %v3891_v28, %v1385_v6 }
 0xcdb   :  { %1389 = vrot.lane.b32.xlu1 %v1387_v7, %s4108_s2 }
 0xce0   :  { %v1588_v11 = vpop.permute.xlu1 %1587 }
 0xce1   :  { %v1590_v46 = vmul.f32 %v3893_v10, %v1588_v11 }
 0xce3   :  { %1592 = vrot.lane.b32.xlu0 %v1590_v46, %s4108_s2 }
 0xd3d   :  { %v1188_v17 = vpop.permute.xlu0 %1187 }
 0xd3e   :  { %v4591_v51 = vadd.f32 %v1188_v17, %v1180_v16 }
 0xd40   :  { %3894 = vtanh.f32 %v4591_v51 }
 0xd4a   :  { %v3895_v15 = vpop.eup %3894 }
 0xd4b   :  { %1193 = vrot.lane.b32.xlu1 %v3895_v15, %s4108_s2 }
 0xd4d   :  { %v1390_v61 = vpop.permute.xlu1 %1389 }
 0xd4e   :  { %v4596_v19 = vadd.f32 %v1390_v61, %v1382_v18 }
 0xd50   :  { %3896 = vtanh.f32 %v4596_v19 }
 0xd55   :  { %v1593_v21 = vpop.permute.xlu0 %1592 }
 0xd56   :  { %v4600_v22 = vadd.f32 %v1593_v21, %v1585_v20 }
 0xd58   :  { %3898 = vtanh.f32 %v4600_v22 }
 0xd5a   :  { %v3897_v5 = vpop.eup %3896 }
 0xd5b   :  { %1395 = vrot.lane.b32.xlu0 %v3897_v5, %s4108_s2 }
 0xd62   :  { %v3899_v53 = vpop.eup %3898 }
 0xd63   :  { %1598 = vrot.lane.b32.xlu1 %v3899_v53, %s4108_s2 }
 0xdbd   :  { %v1194_v23 = vpop.permute.xlu1 %1193 }
 0xdbe   :  { %v1196_v8 = vmul.f32 %v3887_v55, %v1194_v23 }
 0xdc0   :  { %1404 = vrot.lane.b32.xlu1 %v1196_v8, %s4110_s16 }
 0xdcd   :  { %v1396_v24 = vpop.permute.xlu0 %1395 }
 0xdce   :  { %v1398_v26 = vmul.f32 %v3891_v28, %v1396_v24 }
 0xdd0   :  { %1400 = vrot.lane.b32.xlu0 %v1398_v26, %s4109_s0  ;;  %1606 = vrot.lane.b32.xlu1 %v1398_v26, %s4110_s16 }
 0xdd5   :  { %v1599_v12 = vpop.permute.xlu1 %1598 }
 0xdd6   :  { %v1601_v27 = vmul.f32 %v3893_v10, %v1599_v12 }
 0xdd8   :  { %1603 = vrot.lane.b32.xlu0 %v1601_v27, %s4109_s0 }
 0xe32   :  { %v1405_v29 = vpop.permute.xlu1 %1404 }
 0xe42   :  { %v1401_v31 = vpop.permute.xlu0 %1400  ;;  %v1607_v36 = vpop.permute.xlu1 %1606 }
 0xe43   :  { %v1407_v32 = vsel %vm277_vm2, %v1401_v31, %v1405_v29 }
 0xe44   :  { %3340 = vmatmul.mubr.msk.f32.vlgmr.msra.gmra.mrb[18].mxu0 %vm381_vm3, %v1407_v32 }
 0xe45   :  { %3670 = vmatpush3.bf16.msra.mxu0 %v4295_v34  ;;  %3369 = vmatprep.mubr.msk.f32.mxu0 %vm4106_vm0, %v4107_v2 }
 0xe46   :  { %3671 = vmatprep.subr.bf16.mxu0 %v4105_v1 }
 0xe49   :  { %3673 = vmatpush3.bf16.msra.mxu0 %v4312_v39 }
 0xe4a   :  { %3674 = vmatprep.subr.bf16.mxu0 %v4105_v1  ;;  %v1604_v35 = vpop.permute.xlu0 %1603 }
 0xe4b   :  { %v1609_v30 = vsel %vm277_vm2, %v1604_v35, %v1607_v36 }
 0xe4d   :  { %3676 = vmatpush3.bf16.msra.mxu0 %v4330_v44 }
 0xe4e   :  { %3677 = vmatprep.subr.bf16.mxu0 %v4105_v1 }
 0xe51   :  { %3679 = vmatpush3.bf16.msra.mxu0 %v4346_v49 }
 0xe52   :  { %3692 = vmatprep.subr.bf16.mxu0 %v4105_v1 }
 0xe54   :  { %3370 = vmatmul.mubr.msk.f32.vlgmr.msra.gmra.mrb[20].mxu0 %vm381_vm3, %v1609_v30 }
 0xe55   :  { %3694 = vmatpush3.bf16.msra.mxu0 %v4253_v9  ;;  %3399 = vmatprep.mubr.msk.f32.mxu0 %vm4106_vm0, %v4107_v2 }
 0xe56   :  { %3695 = vmatprep.subr.bf16.mxu0 %v4105_v1 }
 0xe59   :  { %3697 = vmatpush3.bf16.msra.mxu0 %v4266_v13 }
 0xe5a   :  { %3710 = vmatprep.subr.bf16.mxu0 %v4105_v1 }
 0xe5c   :  { %3400 = vmatmul.mubr.msk.f32.vlgmr.msra.gmra.mrb[22].mxu0 %vm277_vm2, %v1604_v35 }
 0xe5d   :  { %3712 = vmatpush3.bf16.msra.mxu0 %v4396_v33  ;;  %3437 = vmatprep.mubr.msk.f32.mxu0 %vm4106_vm0, %v4107_v2 }
 0xe5e   :  { %3713 = vmatprep.subr.bf16.mxu0 %v4105_v1 }
 0xe61   :  { %3715 = vmatpush3.bf16.msra.mxu0 %v4400_v37 }
 0xe62   :  { %3716 = vmatprep.subr.bf16.mxu0 %v4105_v1 }
 0xe65   :  { %3718 = vmatpush3.bf16.msra.mxu0 %v4406_v40 }
 0xe66   :  { %3719 = vmatprep.subr.bf16.mxu0 %v4105_v1 }
 0xe69   :  { %3721 = vmatpush3.bf16.msra.mxu0 %v4413_v45 }
 0xe6a   :  { %3728 = vmatprep.subr.bf16.mxu0 %v4105_v1 }
 0xf17   :  { %v1477_v52 = vpop.f32.mrb[18].mxu0 }
 0xf18   :  { %v1478_v38 = vadd.f32 %v4459_v63, %v1477_v52  ;;  %v3341_v41 = vpop.f32.mrb[19].mxu0 }
 0xf1a   :  { %3900 = vtanh.f32 %v1478_v38  ;;  %v2908_v3 = vmul.f32 -1.442695, %v1478_v38 }
 0xf24   :  { %v3901_v42 = vpop.eup %3900 }
 0xf25   :  { %1490 = vrot.lane.b32.xlu0 %v3901_v42, %s4108_s2 }
 0xf27   :  { %v1679_v43 = vpop.f32.mrb[20].mxu0 }
 0xf28   :  { %v1680_v47 = vadd.f32 %v4380_v60, %v1679_v43  ;;  %v3371_v48 = vpop.f32.mrb[21].mxu0 }
 0xf2a   :  { %3902 = vtanh.f32 %v1680_v47  ;;  %v2912_v25 = vmul.f32 -1.442695, %v1680_v47 }
 0xf2f   :  { %v1881_v59 = vpop.f32.mrb[22].mxu0 }
 0xf30   :  { %v1885_v14 = vadd.f32 %v1881_v59, %v230_v58  ;;  %v3401_v55 = vpop.f32.mrb[23].mxu0 }
 0xf32   :  { %3904 = vtanh.f32 %v1885_v14  ;;  %v2916_v28 = vmul.f32 -1.442695, %v1885_v14 }
 0xf33   :  { %3906 = vpow2.f32 %v2908_v3 }
 0xf34   :  { %v3903_v62 = vpop.eup %3902  ;;  %3908 = vpow2.f32 %v2912_v25  ;;  %v235_v25 = vadd.f32 %v4643_v50, %v4364_v57 }
 0xf35   :  { %1692 = vrot.lane.b32.xlu1 %v3903_v62, %s4108_s2 }
 0xf3c   :  { %v3905_v0 = vpop.eup %3904 }
 0xf3d   :  { %1895 = vrot.lane.b32.xlu0 %v3905_v0, %s4108_s2  ;;  %v3907_v60 = vpop.eup %3906  ;;  %v4707_v0 = vld [vmem:[%s4845_s5] ss:$0 sm:$0xff] }
 0xf3e   :  { %v1484_v4 = vadd.f32 1.0, %v3907_v60  ;;  %v3909_v54 = vpop.eup %3908 }
 0xf3f   :  { %v1686_v11 = vadd.f32 1.0, %v3909_v54 }
 0xf40   :  { %3910 = vrcp.f32 %v1484_v4 }
 0xf41   :  { %3912 = vpow2.f32 %v2916_v28 }
 0xf42   :  { %3914 = vrcp.f32 %v1686_v11 }
 0xf4a   :  { %v3911_v6 = vpop.eup %3910 }
 0xf4b   :  { %v3913_v46 = vpop.eup %3912  ;;  %v1488_v5 = vmul.f32 %v3911_v6, %v4591_v51 }
 0xf4c   :  { %v1889_v16 = vadd.f32 1.0, %v3913_v46  ;;  %v3915_v17 = vpop.eup %3914 }
 0xf4d   :  { %v1690_v24 = vmul.f32 %v3915_v17, %v4596_v19 }
 0xf4e   :  { %3916 = vrcp.f32 %v1889_v16 }
 0xf58   :  { %v3917_v61 = vpop.eup %3916 }
 0xf59   :  { %v1893_v27 = vmul.f32 %v3917_v61, %v4600_v22 }
 0xf97   :  { %v1491_v7 = vpop.permute.xlu0 %1490 }
 0xf98   :  { %v1493_v10 = vmul.f32 %v3911_v6, %v1491_v7 }
 0xf9a   :  { %1495 = vrot.lane.b32.xlu1 %v1493_v10, %s4108_s2 }
 0xfa7   :  { %v1693_v15 = vpop.permute.xlu1 %1692 }
 0xfa8   :  { %v1695_v18 = vmul.f32 %v3915_v17, %v1693_v15 }
 0xfaa   :  { %1697 = vrot.lane.b32.xlu0 %v1695_v18, %s4108_s2 }
 0xfaf   :  { %v1896_v20 = vpop.permute.xlu0 %1895 }
 0xfb0   :  { %v1898_v21 = vmul.f32 %v3917_v61, %v1896_v20 }
 0xfb2   :  { %1900 = vrot.lane.b32.xlu1 %v1898_v21, %s4108_s2 }
0x100c   :  { %v1496_v53 = vpop.permute.xlu1 %1495 }
0x100d   :  { %v4653_v23 = vadd.f32 %v1496_v53, %v1488_v5 }
0x100f   :  { %3918 = vtanh.f32 %v4653_v23 }
0x1019   :  { %v3919_v8 = vpop.eup %3918 }
0x101a   :  { %1501 = vrot.lane.b32.xlu0 %v3919_v8, %s4108_s2 }
0x101c   :  { %v1698_v26 = vpop.permute.xlu0 %1697 }
0x101d   :  { %v4658_v12 = vadd.f32 %v1698_v26, %v1690_v24 }
0x101f   :  { %3920 = vtanh.f32 %v4658_v12 }
0x1024   :  { %v1901_v29 = vpop.permute.xlu1 %1900 }
0x1025   :  { %v4662_v31 = vadd.f32 %v1901_v29, %v1893_v27 }
0x1027   :  { %3922 = vtanh.f32 %v4662_v31 }
0x1029   :  { %v3921_v51 = vpop.eup %3920 }
0x102a   :  { %1703 = vrot.lane.b32.xlu1 %v3921_v51, %s4108_s2 }
0x1031   :  { %v3923_v32 = vpop.eup %3922 }
0x1032   :  { %1906 = vrot.lane.b32.xlu0 %v3923_v32, %s4108_s2 }
0x108c   :  { %v1502_v35 = vpop.permute.xlu0 %1501 }
0x108d   :  { %v1504_v19 = vmul.f32 %v3911_v6, %v1502_v35 }
0x108f   :  { %1712 = vrot.lane.b32.xlu0 %v1504_v19, %s4110_s16 }
0x109c   :  { %v1704_v36 = vpop.permute.xlu1 %1703 }
0x109d   :  { %v1706_v30 = vmul.f32 %v3915_v17, %v1704_v36 }
0x109f   :  { %1708 = vrot.lane.b32.xlu1 %v1706_v30, %s4109_s0  ;;  %1914 = vrot.lane.b32.xlu0 %v1706_v30, %s4110_s16 }
0x10a4   :  { %v1907_v22 = vpop.permute.xlu0 %1906 }
0x10a5   :  { %v1909_v52 = vmul.f32 %v3917_v61, %v1907_v22 }
0x10a7   :  { %1911 = vrot.lane.b32.xlu1 %v1909_v52, %s4109_s0 }
0x1101   :  { %v1713_v38 = vpop.permute.xlu0 %1712 }
0x1111   :  { %v1709_v41 = vpop.permute.xlu1 %1708  ;;  %v1915_v47 = vpop.permute.xlu0 %1914 }
0x1112   :  { %v1715_v42 = vsel %vm277_vm2, %v1709_v41, %v1713_v38 }
0x1113   :  { %3389 = vmatmul.mubr.msk.f32.vlgmr.msra.gmra.mrb[14].mxu1 %vm381_vm3, %v1715_v42 }
0x1114   :  { %3700 = vmatpush3.bf16.msra.mxu1 %v4295_v34  ;;  %3418 = vmatprep.mubr.msk.f32.mxu1 %vm4106_vm0, %v4107_v2 }
0x1115   :  { %3701 = vmatprep.subr.bf16.mxu1 %v4105_v1 }
0x1118   :  { %3703 = vmatpush3.bf16.msra.mxu1 %v4312_v39 }
0x1119   :  { %3704 = vmatprep.subr.bf16.mxu1 %v4105_v1  ;;  %v1912_v43 = vpop.permute.xlu1 %1911 }
0x111a   :  { %v1917_v48 = vsel %vm277_vm2, %v1912_v43, %v1915_v47 }
0x111c   :  { %3706 = vmatpush3.bf16.msra.mxu1 %v4330_v44 }
0x111d   :  { %3707 = vmatprep.subr.bf16.mxu1 %v4105_v1 }
0x1120   :  { %3709 = vmatpush3.bf16.msra.mxu1 %v4346_v49 }
0x1121   :  { %3722 = vmatprep.subr.bf16.mxu1 %v4105_v1 }
0x1123   :  { %3419 = vmatmul.mubr.msk.f32.vlgmr.msra.gmra.mrb[16].mxu1 %vm381_vm3, %v1917_v48 }
0x1124   :  { %3724 = vmatpush3.bf16.msra.mxu1 %v4253_v9  ;;  %3448 = vmatprep.mubr.msk.f32.mxu1 %vm4106_vm0, %v4107_v2 }
0x1125   :  { %3725 = vmatprep.subr.bf16.mxu1 %v4105_v1 }
0x1128   :  { %3727 = vmatpush3.bf16.msra.mxu1 %v4266_v13 }
0x1129   :  { %3740 = vmatprep.subr.bf16.mxu1 %v4105_v1 }
0x112b   :  { %3449 = vmatmul.mubr.msk.f32.vlgmr.msra.gmra.mrb[18].mxu1 %vm277_vm2, %v1912_v43 }
0x112c   :  { %3742 = vmatpush3.bf16.msra.mxu1 %v4396_v33  ;;  %3486 = vmatprep.mubr.msk.f32.mxu1 %vm4106_vm0, %v4107_v2 }
0x112d   :  { %3743 = vmatprep.subr.bf16.mxu1 %v4105_v1 }
0x1130   :  { %3745 = vmatpush3.bf16.msra.mxu1 %v4400_v37 }
0x1131   :  { %3746 = vmatprep.subr.bf16.mxu1 %v4105_v1 }
0x1134   :  { %3748 = vmatpush3.bf16.msra.mxu1 %v4406_v40 }
0x1135   :  { %3749 = vmatprep.subr.bf16.mxu1 %v4105_v1 }
0x1138   :  { %3751 = vmatpush3.bf16.msra.mxu1 %v4413_v45 }
0x1139   :  { %3758 = vmatprep.subr.bf16.mxu1 %v4105_v1 }
0x11e6   :  { %v1785_v58 = vpop.f32.mrb[14].mxu1 }
0x11e7   :  { %v1786_v59 = vadd.f32 %v4459_v63, %v1785_v58  ;;  %v3390_v14 = vpop.f32.mrb[15].mxu1 }
0x11e9   :  { %3924 = vtanh.f32 %v1786_v59  ;;  %v2914_v7 = vmul.f32 -1.442695, %v1786_v59 }
0x11f3   :  { %v3925_v55 = vpop.eup %3924 }
0x11f4   :  { %1798 = vrot.lane.b32.xlu1 %v3925_v55, %s4108_s2 }
0x11f6   :  { %v1987_v62 = vpop.f32.mrb[16].mxu1 }
0x11f7   :  { %v1988_v3 = vadd.f32 %v4707_v0, %v1987_v62  ;;  %v3420_v60 = vpop.f32.mrb[17].mxu1 }
0x11f9   :  { %3926 = vtanh.f32 %v1988_v3  ;;  %v2918_v11 = vmul.f32 -1.442695, %v1988_v3 }
0x11fe   :  { %v2189_v4 = vpop.f32.mrb[18].mxu1 }
0x11ff   :  { %v2193_v63 = vadd.f32 %v2189_v4, %v235_v25  ;;  %v3450_v28 = vpop.f32.mrb[19].mxu1 }
0x1201   :  { %3928 = vtanh.f32 %v2193_v63  ;;  %v2922_v16 = vmul.f32 -1.442695, %v2193_v63 }
0x1202   :  { %3930 = vpow2.f32 %v2914_v7 }
0x1203   :  { %v3927_v54 = vpop.eup %3926  ;;  %3932 = vpow2.f32 %v2918_v11 }
0x1204   :  { %2000 = vrot.lane.b32.xlu0 %v3927_v54, %s4108_s2 }
0x120b   :  { %v3929_v6 = vpop.eup %3928 }
0x120c   :  { %2203 = vrot.lane.b32.xlu1 %v3929_v6, %s4108_s2  ;;  %v3931_v10 = vpop.eup %3930 }
0x120d   :  { %v1792_v46 = vadd.f32 1.0, %v3931_v10  ;;  %v3933_v57 = vpop.eup %3932 }
0x120e   :  { %v1994_v61 = vadd.f32 1.0, %v3933_v57 }
0x120f   :  { %3934 = vrcp.f32 %v1792_v46 }
0x1210   :  { %3936 = vpow2.f32 %v2922_v16 }
0x1211   :  { %3938 = vrcp.f32 %v1994_v61 }
0x1219   :  { %v3935_v17 = vpop.eup %3934 }
0x121a   :  { %v3937_v20 = vpop.eup %3936  ;;  %v1796_v29 = vmul.f32 %v3935_v17, %v4653_v23 }
0x121b   :  { %v2197_v21 = vadd.f32 1.0, %v3937_v20  ;;  %v3939_v5 = vpop.eup %3938 }
0x121c   :  { %v1998_v19 = vmul.f32 %v3939_v5, %v4658_v12 }
0x121d   :  { %3940 = vrcp.f32 %v2197_v21 }
0x1227   :  { %v3941_v24 = vpop.eup %3940 }
0x1228   :  { %v2201_v22 = vmul.f32 %v3941_v24, %v4662_v31 }
0x1266   :  { %v1799_v15 = vpop.permute.xlu1 %1798 }
0x1267   :  { %v1801_v18 = vmul.f32 %v3935_v17, %v1799_v15 }
0x1269   :  { %1803 = vrot.lane.b32.xlu0 %v1801_v18, %s4108_s2 }
0x1276   :  { %v2001_v53 = vpop.permute.xlu0 %2000 }
0x1277   :  { %v2003_v8 = vmul.f32 %v3939_v5, %v2001_v53 }
0x1279   :  { %2005 = vrot.lane.b32.xlu1 %v2003_v8, %s4108_s2 }
0x127e   :  { %v2204_v26 = vpop.permute.xlu1 %2203 }
0x127f   :  { %v2206_v27 = vmul.f32 %v3941_v24, %v2204_v26 }
0x1281   :  { %2208 = vrot.lane.b32.xlu0 %v2206_v27, %s4108_s2 }
0x12db   :  { %v1804_v51 = vpop.permute.xlu0 %1803 }
0x12dc   :  { %v4718_v32 = vadd.f32 %v1804_v51, %v1796_v29 }
0x12de   :  { %3942 = vtanh.f32 %v4718_v32 }
0x12e8   :  { %v3943_v35 = vpop.eup %3942 }
0x12e9   :  { %1809 = vrot.lane.b32.xlu1 %v3943_v35, %s4108_s2 }
0x12eb   :  { %v2006_v36 = vpop.permute.xlu1 %2005 }
0x12ec   :  { %v4723_v30 = vadd.f32 %v2006_v36, %v1998_v19 }
0x12ee   :  { %3944 = vtanh.f32 %v4723_v30 }
0x12f3   :  { %v2209_v52 = vpop.permute.xlu0 %2208 }
0x12f4   :  { %v4727_v38 = vadd.f32 %v2209_v52, %v2201_v22 }
0x12f6   :  { %3946 = vtanh.f32 %v4727_v38 }
0x12f8   :  { %v3945_v23 = vpop.eup %3944 }
0x12f9   :  { %2011 = vrot.lane.b32.xlu0 %v3945_v23, %s4108_s2 }
0x1300   :  { %v3947_v41 = vpop.eup %3946 }
0x1301   :  { %2214 = vrot.lane.b32.xlu1 %v3947_v41, %s4108_s2 }
0x135b   :  { %v1810_v42 = vpop.permute.xlu1 %1809 }
0x135c   :  { %v1812_v12 = vmul.f32 %v3935_v17, %v1810_v42 }
0x135e   :  { %2020 = vrot.lane.b32.xlu1 %v1812_v12, %s4110_s16 }
0x136b   :  { %v2012_v43 = vpop.permute.xlu0 %2011 }
0x136c   :  { %v2014_v47 = vmul.f32 %v3939_v5, %v2012_v43 }
0x136e   :  { %2016 = vrot.lane.b32.xlu0 %v2014_v47, %s4109_s0  ;;  %2222 = vrot.lane.b32.xlu1 %v2014_v47, %s4110_s16 }
0x1373   :  { %v2215_v31 = vpop.permute.xlu1 %2214 }
0x1374   :  { %v2217_v48 = vmul.f32 %v3941_v24, %v2215_v31 }
0x1376   :  { %2219 = vrot.lane.b32.xlu0 %v2217_v48, %s4109_s0 }
0x13d0   :  { %v2021_v58 = vpop.permute.xlu1 %2020 }
0x13e0   :  { %v2017_v59 = vpop.permute.xlu0 %2016  ;;  %v2223_v62 = vpop.permute.xlu1 %2222 }
0x13e1   :  { %v2023_v14 = vsel %vm277_vm2, %v2017_v59, %v2021_v58 }
0x13e2   :  { %3438 = vmatmul.mubr.msk.f32.vlgmr.msra.gmra.mrb[24].mxu0 %vm381_vm3, %v2023_v14 }
0x13e3   :  { %3730 = vmatpush3.bf16.msra.mxu0 %v4295_v34  ;;  %3467 = vmatprep.mubr.msk.f32.mxu0 %vm4106_vm0, %v4107_v2 }
0x13e4   :  { %3731 = vmatprep.subr.bf16.mxu0 %v4105_v1 }
0x13e7   :  { %3733 = vmatpush3.bf16.msra.mxu0 %v4312_v39 }
0x13e8   :  { %3734 = vmatprep.subr.bf16.mxu0 %v4105_v1  ;;  %v2220_v55 = vpop.permute.xlu0 %2219 }
0x13e9   :  { %v2225_v3 = vsel %vm277_vm2, %v2220_v55, %v2223_v62 }
0x13eb   :  { %3736 = vmatpush3.bf16.msra.mxu0 %v4330_v44 }
0x13ec   :  { %3737 = vmatprep.subr.bf16.mxu0 %v4105_v1 }
0x13ef   :  { %3739 = vmatpush3.bf16.msra.mxu0 %v4346_v49 }
0x13f0   :  { %3752 = vmatprep.subr.bf16.mxu0 %v4105_v1 }
0x13f2   :  { %3468 = vmatmul.mubr.msk.f32.vlgmr.msra.gmra.mrb[26].mxu0 %vm381_vm3, %v2225_v3 }
0x13f3   :  { %3754 = vmatpush3.bf16.msra.mxu0 %v4253_v9  ;;  %3497 = vmatprep.mubr.msk.f32.mxu0 %vm4106_vm0, %v4107_v2 }
0x13f4   :  { %3755 = vmatprep.subr.bf16.mxu0 %v4105_v1 }
0x13f7   :  { %3757 = vmatpush3.bf16.msra.mxu0 %v4266_v13  ;;  %v4769_v13 = vld [vmem:[%s4847_s7] ss:$0 sm:$0xff] }
0x13f8   :  { %3770 = vmatprep.subr.bf16.mxu0 %v4105_v1 }
0x13fa   :  { %3498 = vmatmul.mubr.msk.f32.vlgmr.msra.gmra.mrb[28].mxu0 %vm277_vm2, %v2220_v55 }
0x13fb   :  { %3772 = vmatpush3.bf16.msra.mxu0 %v4396_v33  ;;  %3535 = vmatprep.mubr.msk.f32.mxu0 %vm4106_vm0, %v4107_v2 }
0x13fc   :  { %3773 = vmatprep.subr.bf16.mxu0 %v4105_v1 }
0x13ff   :  { %3775 = vmatpush3.bf16.msra.mxu0 %v4400_v37 }
0x1400   :  { %3776 = vmatprep.subr.bf16.mxu0 %v4105_v1 }
0x1403   :  { %3778 = vmatpush3.bf16.msra.mxu0 %v4406_v40 }
0x1404   :  { %3779 = vmatprep.subr.bf16.mxu0 %v4105_v1 }
0x1407   :  { %3781 = vmatpush3.bf16.msra.mxu0 %v4413_v45  ;;  %v240_v45 = vadd.f32 %v4643_v50, %v4362_v56 }
0x14b5   :  { %v2093_v9 = vpop.f32.mrb[24].mxu0 }
0x14b6   :  { %v2094_v33 = vadd.f32 %v4769_v13, %v2093_v9  ;;  %v3439_v60 = vpop.f32.mrb[25].mxu0 }
0x14b8   :  { %3948 = vtanh.f32 %v2094_v33  ;;  %v2920_v10 = vmul.f32 -1.442695, %v2094_v33 }
0x14c2   :  { %v3949_v25 = vpop.eup %3948 }
0x14c3   :  { %2106 = vrot.lane.b32.xlu0 %v3949_v25, %s4108_s2 }
0x14c5   :  { %v2295_v37 = vpop.f32.mrb[26].mxu0 }
0x14c6   :  { %v2296_v40 = vadd.f32 %v4707_v0, %v2295_v37  ;;  %v3469_v4 = vpop.f32.mrb[27].mxu0 }
0x14c8   :  { %3950 = vtanh.f32 %v2296_v40  ;;  %v2924_v46 = vmul.f32 -1.442695, %v2296_v40 }
0x14cd   :  { %v2497_v63 = vpop.f32.mrb[28].mxu0 }
0x14ce   :  { %v2501_v28 = vadd.f32 %v2497_v63, %v240_v45  ;;  %v3499_v54 = vpop.f32.mrb[29].mxu0 }
0x14d0   :  { %3952 = vtanh.f32 %v2501_v28  ;;  %v2928_v57 = vmul.f32 -1.442695, %v2501_v28 }
0x14d1   :  { %3954 = vpow2.f32 %v2920_v10 }
0x14d2   :  { %v3951_v6 = vpop.eup %3950  ;;  %3956 = vpow2.f32 %v2924_v46 }
0x14d3   :  { %2308 = vrot.lane.b32.xlu1 %v3951_v6, %s4108_s2 }
0x14da   :  { %v3953_v7 = vpop.eup %3952 }
0x14db   :  { %2511 = vrot.lane.b32.xlu0 %v3953_v7, %s4108_s2  ;;  %v3955_v11 = vpop.eup %3954 }
0x14dc   :  { %v2100_v16 = vadd.f32 1.0, %v3955_v11  ;;  %v3957_v56 = vpop.eup %3956 }
0x14dd   :  { %v2302_v18 = vadd.f32 1.0, %v3957_v56 }
0x14de   :  { %3958 = vrcp.f32 %v2100_v16 }
0x14df   :  { %3960 = vpow2.f32 %v2928_v57 }
0x14e0   :  { %3962 = vrcp.f32 %v2302_v18 }
0x14e8   :  { %v3959_v50 = vpop.eup %3958 }
0x14e9   :  { %v3961_v61 = vpop.eup %3960  ;;  %v2104_v27 = vmul.f32 %v3959_v50, %v4718_v32 }
0x14ea   :  { %v2505_v20 = vadd.f32 1.0, %v3961_v61  ;;  %v3963_v21 = vpop.eup %3962 }
0x14eb   :  { %v2306_v19 = vmul.f32 %v3963_v21, %v4723_v30 }
0x14ec   :  { %3964 = vrcp.f32 %v2505_v20 }
0x14f6   :  { %v3965_v8 = vpop.eup %3964 }
0x14f7   :  { %v2509_v52 = vmul.f32 %v3965_v8, %v4727_v38 }
0x1535   :  { %v2107_v17 = vpop.permute.xlu0 %2106 }
0x1536   :  { %v2109_v15 = vmul.f32 %v3959_v50, %v2107_v17 }
0x1538   :  { %2111 = vrot.lane.b32.xlu1 %v2109_v15, %s4108_s2 }
0x1545   :  { %v2309_v5 = vpop.permute.xlu1 %2308 }
0x1546   :  { %v2311_v53 = vmul.f32 %v3963_v21, %v2309_v5 }
0x1548   :  { %2313 = vrot.lane.b32.xlu0 %v2311_v53, %s4108_s2 }
0x154d   :  { %v2512_v24 = vpop.permute.xlu0 %2511 }
0x154e   :  { %v2514_v26 = vmul.f32 %v3965_v8, %v2512_v24 }
0x1550   :  { %2516 = vrot.lane.b32.xlu1 %v2514_v26, %s4108_s2 }
0x15aa   :  { %v2112_v29 = vpop.permute.xlu1 %2111 }
0x15ab   :  { %v4782_v51 = vadd.f32 %v2112_v29, %v2104_v27 }
0x15ad   :  { %3966 = vtanh.f32 %v4782_v51 }
0x15b7   :  { %v3967_v35 = vpop.eup %3966 }
0x15b8   :  { %2117 = vrot.lane.b32.xlu0 %v3967_v35, %s4108_s2 }
0x15ba   :  { %v2314_v36 = vpop.permute.xlu0 %2313 }
0x15bb   :  { %v4787_v22 = vadd.f32 %v2314_v36, %v2306_v19 }
0x15bd   :  { %3968 = vtanh.f32 %v4787_v22 }
0x15c2   :  { %v2517_v23 = vpop.permute.xlu1 %2516 }
0x15c3   :  { %v2519_v41 = vadd.f32 %v2517_v23, %v2509_v52 }
0x15c5   :  { %3970 = vtanh.f32 %v2519_v41  ;;  %v2740_v41 = vld [vmem:[#allocation8 + $0x18] sm:$0xff] }
0x15c7   :  { %v3969_v32 = vpop.eup %3968 }
0x15c8   :  { %2319 = vrot.lane.b32.xlu1 %v3969_v32, %s4108_s2  ;;  %v2737_v32 = vld [vmem:[#allocation8] sm:$0xff] }
0x15cf   :  { %v3971_v42 = vpop.eup %3970 }
0x15d0   :  { %2522 = vrot.lane.b32.xlu0 %v3971_v42, %s4108_s2 }
0x162a   :  { %v2118_v12 = vpop.permute.xlu0 %2117 }
0x162b   :  { %v2120_v43 = vmul.f32 %v3959_v50, %v2118_v12  ;;  %v2739_v12 = vld [vmem:[#allocation8 + $0x10] sm:$0xff] }
0x162d   :  { %2328 = vrot.lane.b32.xlu0 %v2120_v43, %s4110_s16  ;;  %v2742_v43 = vld [vmem:[#allocation8 + $0x28] sm:$0xff] }
0x163a   :  { %v2320_v30 = vpop.permute.xlu1 %2319 }
0x163b   :  { %v2322_v47 = vmul.f32 %v3963_v21, %v2320_v30  ;;  %v2744_v30 = vld [vmem:[#allocation8 + $0x38] sm:$0xff] }
0x163d   :  { %2324 = vrot.lane.b32.xlu1 %v2322_v47, %s4109_s0  ;;  %2530 = vrot.lane.b32.xlu0 %v2322_v47, %s4110_s16  ;;  %v3784_v47 = vpack.c.bf16 %v2739_v12, %v2737_v32 }
0x1642   :  { %v2523_v38 = vpop.permute.xlu0 %2522 }
0x1643   :  { %v2525_v31 = vmul.f32 %v3965_v8, %v2523_v38  ;;  %v3786_v38 = vpack.c.bf16 %v2744_v30, %v2742_v43 }
0x1645   :  { %2527 = vrot.lane.b32.xlu1 %v2525_v31, %s4109_s0  ;;  %v2741_v31 = vld [vmem:[#allocation8 + $0x20] sm:$0xff] }
0x169f   :  { %v2329_v48 = vpop.permute.xlu0 %2328 }
0x16af   :  { %v2325_v58 = vpop.permute.xlu1 %2324  ;;  %v2531_v55 = vpop.permute.xlu0 %2530 }
0x16b0   :  { %v2331_v59 = vsel %vm277_vm2, %v2325_v58, %v2329_v48  ;;  %v2743_v48 = vld [vmem:[#allocation8 + $0x30] sm:$0xff] }
0x16b1   :  { %3487 = vmatmul.mubr.msk.f32.vlgmr.msra.gmra.mrb[20].mxu1 %vm381_vm3, %v2331_v59  ;;  %v3788_v58 = vpack.c.bf16 %v2743_v48, %v2741_v31 }
0x16b2   :  { %3760 = vmatpush3.bf16.msra.mxu1 %v4295_v34  ;;  %3516 = vmatprep.mubr.msk.f32.mxu1 %vm4106_vm0, %v4107_v2 }
0x16b3   :  { %3761 = vmatprep.subr.bf16.mxu1 %v4105_v1 }
0x16b6   :  { %3763 = vmatpush3.bf16.msra.mxu1 %v4312_v39 }
0x16b7   :  { %3764 = vmatprep.subr.bf16.mxu1 %v4105_v1  ;;  %v2528_v14 = vpop.permute.xlu1 %2527 }
0x16b8   :  { %v2533_v62 = vsel %vm277_vm2, %v2528_v14, %v2531_v55 }
0x16ba   :  { %3766 = vmatpush3.bf16.msra.mxu1 %v4330_v44 }
0x16bb   :  { %3767 = vmatprep.subr.bf16.mxu1 %v4105_v1 }
0x16be   :  { %3769 = vmatpush3.bf16.msra.mxu1 %v4346_v49 }
0x16c1   :  { %3517 = vmatmul.mubr.msk.f32.vlgmr.msra.gmra.mrb[22].mxu1 %vm381_vm3, %v2533_v62 }
0x16c2   :  { %2826 = vmatprep.mubr.f32.mxu1 %v4107_v2 }
0x1784   :  { %v2401_v34 = vpop.f32.mrb[20].mxu1 }
0x1785   :  { %v2402_v3 = vadd.f32 %v4769_v13, %v2401_v34  ;;  %v3488_v39 = vpop.f32.mrb[21].mxu1  ;;  %v2747_v34 = vlaneseq }
0x1787   :  { %3972 = vtanh.f32 %v2402_v3  ;;  %v2926_v60 = vmul.f32 -1.442695, %v2402_v3  ;;  %v2748_v3 = vshrl.u32 %v2747_v34, 7 }
0x1789   :  { %v2749_v39 = vsub.s32 0, %v2748_v3 }
0x1791   :  { %v3973_v9 = vpop.eup %3972 }
0x1792   :  { %2414 = vrot.lane.b32.xlu1 %v3973_v9, %s4108_s2  ;;  %v2745_v9 = vld [vmem:[%s4849_s9] sm:$0x3] }
0x1794   :  { %v2603_v44 = vpop.f32.mrb[22].mxu1 }
0x1795   :  { %v2604_v1 = vadd.f32 %v4707_v0, %v2603_v44  ;;  %v3518_v33 = vpop.f32.mrb[23].mxu1  ;;  %v2753_v44 = vsub.s32 1, %v2748_v3 }
0x1796   :  { %v2835_v33 = vld [vmem:[%s4850_s10] sm:$0x3] }
0x1797   :  { %3974 = vtanh.f32 %v2604_v1  ;;  %v2930_v2 = vmul.f32 -1.442695, %v2604_v1  ;;  %v2750_v1 = vrot.slane %v2745_v9, %v2749_v39 }
0x1798   :  { %3976 = vpow2.f32 %v2926_v60 }
0x1799   :  { %3978 = vpow2.f32 %v2930_v2  ;;  %v2840_v2 = vrot.slane %v2835_v33, %v2749_v39 }
0x17a1   :  { %v3975_v49 = vpop.eup %3974 }
0x17a2   :  { %2616 = vrot.lane.b32.xlu0 %v3975_v49, %s4108_s2  ;;  %v3977_v25 = vpop.eup %3976  ;;  %v2754_v49 = vrot.slane %v2745_v9, %v2753_v44 }
0x17a3   :  { %v2408_v37 = vadd.f32 1.0, %v3977_v25  ;;  %v3979_v40 = vpop.eup %3978 }
0x17a4   :  { %v2610_v28 = vadd.f32 1.0, %v3979_v40 }
0x17a5   :  { %3980 = vrcp.f32 %v2408_v37 }
0x17a6   :  { %3982 = vrcp.f32 %v2610_v28 }
0x17af   :  { %v3981_v4 = vpop.eup %3980 }
0x17b0   :  { %v3983_v0 = vpop.eup %3982  ;;  %v2412_v7 = vmul.f32 %v3981_v4, %v4782_v51 }
0x17b1   :  { %v2614_v16 = vmul.f32 %v3983_v0, %v4787_v22 }
0x1804   :  { %v2415_v45 = vpop.permute.xlu1 %2414 }
0x1805   :  { %v2417_v63 = vmul.f32 %v3981_v4, %v2415_v45 }
0x1807   :  { %2419 = vrot.lane.b32.xlu1 %v2417_v63, %s4108_s2 }
0x1814   :  { %v2617_v54 = vpop.permute.xlu0 %2616 }
0x1815   :  { %v2619_v6 = vmul.f32 %v3983_v0, %v2617_v54 }
0x1817   :  { %2621 = vrot.lane.b32.xlu0 %v2619_v6, %s4108_s2  ;;  %v2934_v6 = vld [vmem:[#allocation2] ss:$0 sm:$0xff] }
0x1879   :  { %v2420_v10 = vpop.permute.xlu1 %2419 }
0x187a   :  { %v2422_v11 = vadd.f32 %v2420_v10, %v2412_v7 }
0x187c   :  { %3984 = vtanh.f32 %v2422_v11 }
0x1886   :  { %v3985_v46 = vpop.eup %3984 }
0x1887   :  { %2425 = vrot.lane.b32.xlu1 %v3985_v46, %s4108_s2 }
0x1889   :  { %v2622_v57 = vpop.permute.xlu0 %2621 }
0x188a   :  { %v2624_v56 = vadd.f32 %v2622_v57, %v2614_v16 }
0x188c   :  { %3986 = vtanh.f32 %v2624_v56 }
0x1896   :  { %v3987_v50 = vpop.eup %3986 }
0x1897   :  { %2627 = vrot.lane.b32.xlu0 %v3987_v50, %s4108_s2 }
0x18f9   :  { %v2426_v17 = vpop.permute.xlu1 %2425 }
0x18fa   :  { %v2428_v15 = vmul.f32 %v3981_v4, %v2426_v17  ;;  %v2844_v4 = vrot.slane %v2835_v33, %v2753_v44 }
0x18fc   :  { %2636 = vrot.lane.b32.xlu0 %v2428_v15, %s4110_s16 }
0x1909   :  { %v2628_v18 = vpop.permute.xlu0 %2627 }
0x190a   :  { %v2630_v61 = vmul.f32 %v3983_v0, %v2628_v18 }
0x190c   :  { %2632 = vrot.lane.b32.xlu1 %v2630_v61, %s4109_s0 }
0x196e   :  { %v2637_v20 = vpop.permute.xlu0 %2636 }
0x197e   :  { %v2633_v21 = vpop.permute.xlu1 %2632 }
0x197f   :  { %v2639_v5 = vsel %vm277_vm2, %v2633_v21, %v2637_v20 }
0x1980   :  { %3536 = vmatmul.mubr.msk.f32.vlgmr.msra.gmra.mrb[30].mxu0 %vm381_vm3, %v2639_v5 }
0x1a53   :  { %v2709_v53 = vpop.f32.mrb[30].mxu0 }
0x1a54   :  { %v2710_v8 = vadd.f32 %v4769_v13, %v2709_v53  ;;  %v3537_v24 = vpop.f32.mrb[31].mxu0  ;;  %v2738_v13 = vld [vmem:[#allocation8 + $0x8] sm:$0xff] }
0x1a55   :  { %v3782_v42 = vpack.c.bf16 %v2740_v41, %v2738_v13 }
0x1a56   :  { %3988 = vtanh.f32 %v2710_v8  ;;  %v2932_v27 = vmul.f32 -1.442695, %v2710_v8 }
0x1a57   :  { %3783 = vmatprep.subr.bf16.mxu1 %v3782_v42 }
0x1a58   :  { %3990 = vpow2.f32 %v2932_v27  ;;  %3785 = vmatpush1.bf16.msra.mxu1 %v3784_v47 }
0x1a59   :  { %3787 = vmatprep.subr.bf16.mxu1 %v3786_v38 }
0x1a5c   :  { %3789 = vmatpush1.bf16.msra.mxu1 %v3788_v58 }
0x1a60   :  { %v3989_v26 = vpop.eup %3988 }
0x1a61   :  { %2722 = vrot.lane.b32.xlu1 %v3989_v26, %s4108_s2 }
0x1a62   :  { %v3991_v29 = vpop.eup %3990 }
0x1a63   :  { %v2716_v51 = vadd.f32 1.0, %v3991_v29 }
0x1a65   :  { %3992 = vrcp.f32 %v2716_v51 }
0x1a6f   :  { %v3993_v35 = vpop.eup %3992 }
0x1a70   :  { %v2720_v22 = vmul.f32 %v3993_v35, %v2422_v11 }
0x1ad3   :  { %v2723_v19 = vpop.permute.xlu1 %2722 }
0x1ad4   :  { %v2725_v36 = vmul.f32 %v3993_v35, %v2723_v19 }
0x1ad6   :  { %2727 = vrot.lane.b32.xlu0 %v2725_v36, %s4108_s2 }
0x1b48   :  { %v2728_v52 = vpop.permute.xlu0 %2727 }
0x1b49   :  { %v2730_v23 = vadd.f32 %v2728_v52, %v2720_v22 }
0x1b4b   :  { %3994 = vtanh.f32 %v2730_v23 }
0x1b55   :  { %v3995_v59 = vpop.eup %3994 }
0x1b56   :  { %2733 = vrot.lane.b32.xlu1 %v3995_v59, %s4108_s2 }
0x1bc8   :  { %v2734_v14 = vpop.permute.xlu1 %2733 }
0x1bc9   :  { %v2736_v55 = vmul.f32 %v3993_v35, %v2734_v14 }
0x1bcb   :  { %2758 = vrot.lane.b32.xlu0 %v2736_v55, %s4109_s0 }
0x1c3d   :  { %v2759_v62 = vpop.permute.xlu0 %2758 }
0x1c3e   :  { %2933 = vmatmul.mubr.msk.f32.vlgmr.msra.gmra.mrb[24].mxu1 %vm277_vm2, %v2759_v62 }
0x1d11   :  { %v2828_v60 = vpop.f32.mrb[24].mxu1 }
0x1d12   :  { %v2829_v25 = vadd.f32 %v2828_v60, %v2750_v1  ;;  %v2830_v37 = vpop.f32.mrb[25].mxu1 }
0x1d13   :  { %v2831_v40 = vadd.f32 %v2830_v37, %v2754_v49 }
0x1d14   :  { %v2833_v45 = vmax.f32 %v2829_v25, 0.0 }
0x1d15   :  { %v2834_v63 = vmax.f32 %v2831_v40, 0.0 }
0x1d16   :  { %v2847_v28 = vmul.f32 %v2840_v2, %v2833_v45 }
0x1d17   :  { %v2848_v0 = vmul.f32 %v2844_v4, %v2834_v63 }
0x1d19   :  { %v2849_v54 = vadd.f32 %v2848_v0, %v2847_v28 }
0x1d1b   :  { %2850 = vadd.xlane.f32.xlu1 %v2849_v54 }
0x1da8   :  { %v2851_v7 = vpop.xlane.xlu1 %2850 }
0x1da9   :  { %v2859_v10 = vadd.f32 %v2934_v6, %v2851_v7 }
0x1dab   :  { %v2935_v11 = vmul.f32 -1.442695, %v2859_v10 }
0x1dad   :  { %3996 = vpow2.f32 %v2935_v11 }
0x1db7   :  { %v3997_v46 = vpop.eup %3996 }
0x1db8   :  { %v2863_v16 = vadd.f32 1.0, %v3997_v46 }
0x1dba   :  { %3998 = vrcp.f32 %v2863_v16 }
0x1dc4   :  { %v3999_v57 = vpop.eup %3998 }
0x1dc5   :  { %2867 = vst.msk [vmem:[%s4852_s12] sm:$0xff] %vm2866_vm4, %v3999_v57 }
0x1dc6   :  { %2872 = vsyncpa [#allocation4], 1 }
0x1dc7   :  { %2873 = vsyncpa [#allocation6], 1 }
0x1dc8   :  { %2874 = vsyncpa [#allocation9], 1 }

</bundles_post_ra>
